<compile_context>
chip_gen: v5e
topology: v5e:2x2
jax: 0.10.0
libtpu: 0.0.40
codegen_flags: <defaults>
</compile_context>

<pallas_src>
import functools

import jax
import jax.numpy as jnp
from jax.experimental import pallas as pl
from jax.experimental.pallas import tpu as pltpu


def _round_up(x, m):
    return (x + m - 1) // m * m


# ---------------------------------------------------------------------------
# Kernels (fused: vis branch + text branch, lane-dense (TILE_B, 2*P) output)
# ---------------------------------------------------------------------------
def _fused_two_layer_kernel(xv_ref, wv_ref, bv_ref,
                            xt_ref, w1_ref, b1_ref, w2_ref, b2_ref,
                            o_ref, *, out_pad):
    # Vis branch: tanh(xv @ Wv + bv)        (bf16 operands, f32 accumulate)
    vis = jnp.dot(xv_ref[...], wv_ref[...], preferred_element_type=jnp.float32)
    vis = jnp.tanh(vis + bv_ref[...])

    # Text branch: relu(tanh(xt @ W1 + b1) @ W2 + b2)
    h = jnp.dot(xt_ref[...], w1_ref[...], preferred_element_type=jnp.float32)
    h = jnp.tanh(h + b1_ref[...]).astype(jnp.bfloat16)   # narrow h: vregs + MXU
    txt = jnp.dot(h, w2_ref[...], preferred_element_type=jnp.float32)
    txt = jnp.maximum(txt + b2_ref[...], 0.0)

    # Lane-dense stores: both halves are 128-aligned, full-lane slabs.
    o_ref[:, :out_pad] = vis.astype(o_ref.dtype)
    o_ref[:, out_pad:] = txt.astype(o_ref.dtype)


def _fused_one_layer_kernel(xv_ref, wv_ref, bv_ref,
                            xt_ref, wt_ref, bt_ref,
                            o_ref, *, out_pad):
    vis = jnp.dot(xv_ref[...], wv_ref[...], preferred_element_type=jnp.float32)
    vis = jnp.tanh(vis + bv_ref[...])
    txt = jnp.dot(xt_ref[...], wt_ref[...], preferred_element_type=jnp.float32)
    txt = jnp.tanh(txt + bt_ref[...])
    o_ref[:, :out_pad] = vis.astype(o_ref.dtype)
    o_ref[:, out_pad:] = txt.astype(o_ref.dtype)


# ---------------------------------------------------------------------------
# Parameter init (mimics nn.Linear: uniform +/- 1/sqrt(fan_in)), kept in f32
# ---------------------------------------------------------------------------
def mmen_init(key, vis_input_size, text_input_size, out_size):
    params = {}
    k = iter(jax.random.split(key, 8))

    def lin(kw, kb, fan_in, fan_out):
        bound = 1.0 / jnp.sqrt(fan_in)
        w = jax.random.uniform(kw, (fan_in, fan_out), jnp.float32, -bound, bound)
        b = jax.random.uniform(kb, (1, fan_out), jnp.float32, -bound, bound)
        return w, b

    params["vis_w"], params["vis_b"] = lin(next(k), next(k), vis_input_size, out_size)
    if text_input_size == 1024:
        params["txt_w1"], params["txt_b1"] = lin(next(k), next(k), text_input_size, 512)
        params["txt_w2"], params["txt_b2"] = lin(next(k), next(k), 512, out_size)
        params["two_layer_text"] = True
    else:
        params["txt_w"], params["txt_b"] = lin(next(k), next(k), text_input_size, out_size)
        params["two_layer_text"] = False
    return params


# ---------------------------------------------------------------------------
# Forward: one fused pallas_call for both branches
# ---------------------------------------------------------------------------
def mmen_forward(params, vis_x, text_x):
    out_size = params["vis_w"].shape[1]
    P = _round_up(out_size, 128)                 # lane-dense padded out width
    B = vis_x.shape[0]
    TILE_B = 128 if B >= 128 else _round_up(max(B, 1), 8)
    B_pad = _round_up(B, TILE_B)
    grid = (B_pad // TILE_B,)

    def pad2(a, rows, cols):
        return jnp.pad(a, ((0, rows - a.shape[0]), (0, cols - a.shape[1])))

    # bf16 matmul operands; biases stay f32 (added in f32 inside the kernel).
    xv = pad2(vis_x, B_pad, vis_x.shape[1]).astype(jnp.bfloat16)
    xt = pad2(text_x, B_pad, text_x.shape[1]).astype(jnp.bfloat16)
    wv = pad2(params["vis_w"], params["vis_w"].shape[0], P).astype(jnp.bfloat16)
    bv = pad2(params["vis_b"], 1, P)

    Kv = xv.shape[1]
    Kt = xt.shape[1]

    compiler_params = pltpu.CompilerParams(
        dimension_semantics=("parallel",),        # shard batch tiles across TCs
        vmem_limit_bytes=32 * 1024 * 1024,        # sized for v7x's 64 MiB VMEM
    )
    out_shape = jax.ShapeDtypeStruct((B_pad, 2 * P), jnp.float32)
    out_spec = pl.BlockSpec((TILE_B, 2 * P), lambda i: (i, 0))

    if params["two_layer_text"]:
        H = params["txt_w1"].shape[1]            # 512
        w1 = params["txt_w1"].astype(jnp.bfloat16)
        b1 = params["txt_b1"]
        w2 = pad2(params["txt_w2"], H, P).astype(jnp.bfloat16)
        b2 = pad2(params["txt_b2"], 1, P)

        cost = pl.CostEstimate(
            flops=2 * B_pad * (Kv * P + Kt * H + H * P),
            transcendentals=B_pad * (P + H),
            bytes_accessed=(xv.size + xt.size + wv.size + w1.size + w2.size) * 2
                           + (bv.size + b1.size + b2.size) * 4
                           + B_pad * 2 * P * 4,
        )

        out = pl.pallas_call(
            functools.partial(_fused_two_layer_kernel, out_pad=P),
            out_shape=out_shape,
            grid_spec=pltpu.PrefetchScalarGridSpec(
                num_scalar_prefetch=0,
                grid=grid,
                in_specs=[
                    pl.BlockSpec((TILE_B, Kv), lambda i: (i, 0)),   # xv tile
                    pl.BlockSpec((Kv, P), lambda i: (0, 0)),        # Wv (resident)
                    pl.BlockSpec((1, P), lambda i: (0, 0)),         # bv
                    pl.BlockSpec((TILE_B, Kt), lambda i: (i, 0)),   # xt tile
                    pl.BlockSpec((Kt, H), lambda i: (0, 0)),        # W1 (resident)
                    pl.BlockSpec((1, H), lambda i: (0, 0)),         # b1
                    pl.BlockSpec((H, P), lambda i: (0, 0)),         # W2 (resident)
                    pl.BlockSpec((1, P), lambda i: (0, 0)),         # b2
                ],
                out_specs=out_spec,
            ),
            compiler_params=compiler_params,
            cost_estimate=cost,
        )(xv, wv, bv, xt, w1, b1, w2, b2)
    else:
        wt = pad2(params["txt_w"], params["txt_w"].shape[0], P).astype(jnp.bfloat16)
        bt = pad2(params["txt_b"], 1, P)

        cost = pl.CostEstimate(
            flops=2 * B_pad * (Kv * P + Kt * P),
            transcendentals=B_pad * 2 * P,
            bytes_accessed=(xv.size + xt.size + wv.size + wt.size) * 2
                           + (bv.size + bt.size) * 4
                           + B_pad * 2 * P * 4,
        )

        out = pl.pallas_call(
            functools.partial(_fused_one_layer_kernel, out_pad=P),
            out_shape=out_shape,
            grid_spec=pltpu.PrefetchScalarGridSpec(
                num_scalar_prefetch=0,
                grid=grid,
                in_specs=[
                    pl.BlockSpec((TILE_B, Kv), lambda i: (i, 0)),
                    pl.BlockSpec((Kv, P), lambda i: (0, 0)),
                    pl.BlockSpec((1, P), lambda i: (0, 0)),
                    pl.BlockSpec((TILE_B, Kt), lambda i: (i, 0)),
                    pl.BlockSpec((Kt, P), lambda i: (0, 0)),
                    pl.BlockSpec((1, P), lambda i: (0, 0)),
                ],
                out_specs=out_spec,
            ),
            compiler_params=compiler_params,
            cost_estimate=cost,
        )(xv, wv, bv, xt, wt, bt)

    vis_out = out[:B, :out_size]
    text_out = out[:B, P:P + out_size]
    return vis_out, text_out


# ---------------------------------------------------------------------------
if __name__ == "__main__":
    B = 8
    vis_input_size = 32
    text_input_size = 1024   # exercises the two-layer text path (1024 -> 512 -> out)
    out_size = 64

    key = jax.random.PRNGKey(0)
    kp, kv, kt = jax.random.split(key, 3)

    params = mmen_init(kp, vis_input_size, text_input_size, out_size)
    vis_x = jax.random.normal(kv, (B, vis_input_size), jnp.float32)
    text_x = jax.random.normal(kt, (B, text_input_size), jnp.float32)

    vis_out, text_out = mmen_forward(params, vis_x, text_x)
    jax.block_until_ready((vis_out, text_out))

    assert vis_out.shape == (B, out_size) and text_out.shape == (B, out_size)

    # Reference 1: same bf16 operands, f32 accumulation (apples-to-apples).
    xv_b = vis_x.astype(jnp.bfloat16)
    xt_b = text_x.astype(jnp.bfloat16)
    vis_ref_b = jnp.tanh(
        jnp.dot(xv_b, params["vis_w"].astype(jnp.bfloat16),
                preferred_element_type=jnp.float32) + params["vis_b"])
    h_b = jnp.tanh(
        jnp.dot(xt_b, params["txt_w1"].astype(jnp.bfloat16),
                preferred_element_type=jnp.float32) + params["txt_b1"]
    ).astype(jnp.bfloat16)
    text_ref_b = jnp.maximum(
        jnp.dot(h_b, params["txt_w2"].astype(jnp.bfloat16),
                preferred_element_type=jnp.float32) + params["txt_b2"], 0.0)
    assert jnp.allclose(vis_out, vis_ref_b, atol=5e-3, rtol=5e-3)
    assert jnp.allclose(text_out, text_ref_b, atol=5e-3, rtol=5e-3)

    # Reference 2: full-f32 math (original module semantics), loose tolerance
    # for the bf16 matmul operands.
    vis_ref = jnp.tanh(vis_x @ params["vis_w"] + params["vis_b"])
    h_ref = jnp.tanh(text_x @ params["txt_w1"] + params["txt_b1"])
    text_ref = jnp.maximum(h_ref @ params["txt_w2"] + params["txt_b2"], 0.0)
    assert jnp.max(jnp.abs(vis_out - vis_ref)) < 0.1
    assert jnp.max(jnp.abs(text_out - text_ref)) < 0.1

    print("KERNEL_OK")
</pallas_src>

<mosaic_0001>
module attributes {stable_mosaic.version = 11 : i64} {
  func.func @_fused_two_layer_kernel(%arg0: i32, %arg1: memref<8x32xbf16, #tpu.memory_space<vmem>>, %arg2: memref<32x128xbf16, #tpu.memory_space<vmem>>, %arg3: memref<1x128xf32, #tpu.memory_space<vmem>>, %arg4: memref<8x1024xbf16, #tpu.memory_space<vmem>>, %arg5: memref<1024x512xbf16, #tpu.memory_space<vmem>>, %arg6: memref<1x512xf32, #tpu.memory_space<vmem>>, %arg7: memref<512x128xbf16, #tpu.memory_space<vmem>>, %arg8: memref<1x128xf32, #tpu.memory_space<vmem>>, %arg9: memref<8x256xf32, #tpu.memory_space<vmem>>) attributes {dimension_semantics = [#tpu.dimension_semantics<parallel>], iteration_bounds = array<i64: 1>, scalar_prefetch = 0 : i64, scratch_operands = 0 : i64, tpu.core_type = #tpu.core_type<tc>, window_params = [{transform_indices = @transform_0, window_bounds = array<i64: 8, 32>}, {pipeline_mode = #tpu.pipeline_mode<synchronous>, transform_indices = @transform_1, window_bounds = array<i64: 32, 128>}, {pipeline_mode = #tpu.pipeline_mode<synchronous>, transform_indices = @transform_2, window_bounds = array<i64: 1, 128>}, {transform_indices = @transform_3, window_bounds = array<i64: 8, 1024>}, {pipeline_mode = #tpu.pipeline_mode<synchronous>, transform_indices = @transform_4, window_bounds = array<i64: 1024, 512>}, {pipeline_mode = #tpu.pipeline_mode<synchronous>, transform_indices = @transform_5, window_bounds = array<i64: 1, 512>}, {pipeline_mode = #tpu.pipeline_mode<synchronous>, transform_indices = @transform_6, window_bounds = array<i64: 512, 128>}, {pipeline_mode = #tpu.pipeline_mode<synchronous>, transform_indices = @transform_7, window_bounds = array<i64: 1, 128>}, {transform_indices = @transform_8, window_bounds = array<i64: 8, 256>}]} {
    %c0 = arith.constant 0 : index
    %c0_0 = arith.constant 0 : index
    %0 = vector.load %arg1[%c0, %c0_0] : memref<8x32xbf16, #tpu.memory_space<vmem>>, vector<8x32xbf16>
    %c0_1 = arith.constant 0 : index
    %c0_2 = arith.constant 0 : index
    %1 = vector.load %arg2[%c0_1, %c0_2] : memref<32x128xbf16, #tpu.memory_space<vmem>>, vector<32x128xbf16>
    %cst = arith.constant dense<0.000000e+00> : vector<8x128xf32>
    %2 = tpu.matmul %0, %1, %cst {dimension_numbers = #tpu.dot_dimension_numbers<[1], [0], [0], [1], [0, 0, 1, 1], [], []>} : vector<8x32xbf16>, vector<32x128xbf16>, vector<8x128xf32> -> vector<8x128xf32>
    %c0_3 = arith.constant 0 : index
    %c0_4 = arith.constant 0 : index
    %3 = vector.load %arg3[%c0_3, %c0_4] : memref<1x128xf32, #tpu.memory_space<vmem>>, vector<1x128xf32>
    %4 = vector.broadcast %3 : vector<1x128xf32> to vector<8x128xf32>
    %5 = arith.addf %2, %4 : vector<8x128xf32>
    %6 = math.tanh %5 : vector<8x128xf32>
    %c0_5 = arith.constant 0 : index
    %c0_6 = arith.constant 0 : index
    %7 = vector.load %arg4[%c0_5, %c0_6] : memref<8x1024xbf16, #tpu.memory_space<vmem>>, vector<8x1024xbf16>
    %c0_7 = arith.constant 0 : index
    %c0_8 = arith.constant 0 : index
    %8 = vector.load %arg5[%c0_7, %c0_8] : memref<1024x512xbf16, #tpu.memory_space<vmem>>, vector<1024x512xbf16>
    %cst_9 = arith.constant dense<0.000000e+00> : vector<8x512xf32>
    %9 = tpu.matmul %7, %8, %cst_9 {dimension_numbers = #tpu.dot_dimension_numbers<[1], [0], [0], [1], [0, 0, 1, 1], [], []>} : vector<8x1024xbf16>, vector<1024x512xbf16>, vector<8x512xf32> -> vector<8x512xf32>
    %c0_10 = arith.constant 0 : index
    %c0_11 = arith.constant 0 : index
    %10 = vector.load %arg6[%c0_10, %c0_11] : memref<1x512xf32, #tpu.memory_space<vmem>>, vector<1x512xf32>
    %11 = vector.broadcast %10 : vector<1x512xf32> to vector<8x512xf32>
    %12 = arith.addf %9, %11 : vector<8x512xf32>
    %13 = math.tanh %12 : vector<8x512xf32>
    %14 = arith.truncf %13 : vector<8x512xf32> to vector<8x512xbf16>
    %c0_12 = arith.constant 0 : index
    %c0_13 = arith.constant 0 : index
    %15 = vector.load %arg7[%c0_12, %c0_13] : memref<512x128xbf16, #tpu.memory_space<vmem>>, vector<512x128xbf16>
    %cst_14 = arith.constant dense<0.000000e+00> : vector<8x128xf32>
    %16 = tpu.matmul %14, %15, %cst_14 {dimension_numbers = #tpu.dot_dimension_numbers<[1], [0], [0], [1], [0, 0, 1, 1], [], []>} : vector<8x512xbf16>, vector<512x128xbf16>, vector<8x128xf32> -> vector<8x128xf32>
    %c0_15 = arith.constant 0 : index
    %c0_16 = arith.constant 0 : index
    %17 = vector.load %arg8[%c0_15, %c0_16] : memref<1x128xf32, #tpu.memory_space<vmem>>, vector<1x128xf32>
    %18 = vector.broadcast %17 : vector<1x128xf32> to vector<8x128xf32>
    %19 = arith.addf %16, %18 : vector<8x128xf32>
    %cst_17 = arith.constant 0.000000e+00 : f32
    %20 = vector.broadcast %cst_17 : f32 to vector<8x128xf32>
    %21 = arith.maximumf %19, %20 : vector<8x128xf32>
    %c0_18 = arith.constant 0 : index
    %c0_19 = arith.constant 0 : index
    %22 = vector.load %arg9[%c0_18, %c0_19] : memref<8x256xf32, #tpu.memory_space<vmem>>, vector<8x128xf32>
    tpu.vector_store %arg9[%c0_18, %c0_19], %6 {strides = array<i32>} : memref<8x256xf32, #tpu.memory_space<vmem>>, vector<8x128xf32>,
    %c0_20 = arith.constant 0 : index
    %c128 = arith.constant 128 : index
    %23 = vector.load %arg9[%c0_20, %c128] : memref<8x256xf32, #tpu.memory_space<vmem>>, vector<8x128xf32>
    tpu.vector_store %arg9[%c0_20, %c128], %21 {strides = array<i32>} : memref<8x256xf32, #tpu.memory_space<vmem>>, vector<8x128xf32>,
    return
  }
  func.func @transform_0(%arg0: i32) -> (i32, i32) {
    %c0_i32 = arith.constant 0 : i32
    %c0_i32_0 = arith.constant 0 : i32
    return %arg0, %c0_i32 : i32, i32
  }
  func.func @transform_1(%arg0: i32) -> (i32, i32) {
    %c0_i32 = arith.constant 0 : i32
    %c0_i32_0 = arith.constant 0 : i32
    %c0_i32_1 = arith.constant 0 : i32
    return %c0_i32, %c0_i32_0 : i32, i32
  }
  func.func @transform_2(%arg0: i32) -> (i32, i32) {
    %c0_i32 = arith.constant 0 : i32
    %c0_i32_0 = arith.constant 0 : i32
    %c0_i32_1 = arith.constant 0 : i32
    return %c0_i32, %c0_i32_0 : i32, i32
  }
  func.func @transform_3(%arg0: i32) -> (i32, i32) {
    %c0_i32 = arith.constant 0 : i32
    %c0_i32_0 = arith.constant 0 : i32
    return %arg0, %c0_i32 : i32, i32
  }
  func.func @transform_4(%arg0: i32) -> (i32, i32) {
    %c0_i32 = arith.constant 0 : i32
    %c0_i32_0 = arith.constant 0 : i32
    %c0_i32_1 = arith.constant 0 : i32
    return %c0_i32, %c0_i32_0 : i32, i32
  }
  func.func @transform_5(%arg0: i32) -> (i32, i32) {
    %c0_i32 = arith.constant 0 : i32
    %c0_i32_0 = arith.constant 0 : i32
    %c0_i32_1 = arith.constant 0 : i32
    return %c0_i32, %c0_i32_0 : i32, i32
  }
  func.func @transform_6(%arg0: i32) -> (i32, i32) {
    %c0_i32 = arith.constant 0 : i32
    %c0_i32_0 = arith.constant 0 : i32
    %c0_i32_1 = arith.constant 0 : i32
    return %c0_i32, %c0_i32_0 : i32, i32
  }
  func.func @transform_7(%arg0: i32) -> (i32, i32) {
    %c0_i32 = arith.constant 0 : i32
    %c0_i32_0 = arith.constant 0 : i32
    %c0_i32_1 = arith.constant 0 : i32
    return %c0_i32, %c0_i32_0 : i32, i32
  }
  func.func @transform_8(%arg0: i32) -> (i32, i32) {
    %c0_i32 = arith.constant 0 : i32
    %c0_i32_0 = arith.constant 0 : i32
    return %arg0, %c0_i32 : i32, i32
  }
}

</mosaic_0001>

<bundles_post_ra>
// kernel: tpu_custom_call.1
= control target key start
LH: loop header
LB: loop body
LE: loop exit
PB: predicated region body
PF: predicated region fallthrough
CT: control target
= control target key end

     0   :  { %13 = vsyncpa [#allocation3], 0  ;;  %s4297_s0 = inlined_call_operand.hbm [shape: bf16[8,32], index: 0, kind: input, shape index: {}]   ;;  %s4298_s1 = inlined_call_operand.hbm [shape: bf16[32,128], index: 1, kind: input, shape index: {}]   ;;  %s4299_s2 = inlined_call_operand.hbm [shape: f32[1,128], index: 2, kind: input, shape index: {}]   ;;  %s4300_s3 = inlined_call_operand.hbm [shape: bf16[8,1024], index: 3, kind: input, shape index: {}]   ;;  %s4301_s4 = inlined_call_operand.hbm [shape: bf16[1024,512], index: 4, kind: input, shape index: {}]   ;;  %s4302_s5 = inlined_call_operand.vmem [shape: f32[1,512], index: 5, kind: input, shape index: {}]   ;;  %s4303_s6 = inlined_call_operand.hbm [shape: bf16[512,128], index: 6, kind: input, shape index: {}]   ;;  %s4304_s7 = inlined_call_operand.vmem [shape: f32[1,128], index: 7, kind: input, shape index: {}]   ;;  %s4305_s8 = inlined_call_operand.hbm [shape: f32[8,256], index: 8, kind: output, shape index: {}]  }
   0x1   :  { %14 = vsyncpa [#allocation6], 0 }
   0x2   :  { %15 = vsyncpa [#allocation9], 0 }
   0x3   :  { %16 = vsyncpa [#allocation12], 0  ;;  %s33_s29 = sshll.u32 %s4298_s1, 4  ;;  %s34_s29 = int_to_ptr.hbm [resolvable:$true] %s33_s29 }
   0x4   :  { %17 = vsyncpa [#allocation4], 0  ;;  %s4147_s30 = smov [#allocation5]   ;;  %s58_s12 = sshll.u32 %s4300_s3, 4  ;;  %s59_s12 = int_to_ptr.hbm [resolvable:$true] %s58_s12 }
   0x5   :  { %s35_s9 = sshll.u32 %s4147_s30, 4  ;;  %s4148_s13 = smov 64   ;;  %s36_s9 = int_to_ptr.vmem [resolvable:$true] %s35_s9 }
   0x6   :  { %s4149_s14 = smov 4   ;;  %s4150_s15 = smov [#allocation8]  }
   0x7   :  { %41 = dma.hbm_to_vmem [thread:$0]  %s34_s29, 256, %s36_s9, [#allocation6], %s4148_s13, %s4148_s13, %s4149_s14  }
   0x8   :  { %s60_s16 = sshll.u32 %s4150_s15, 4  ;;  %s23_s18 = sshll.u32 %s4297_s0, 4  ;;  %s61_s16 = int_to_ptr.vmem [resolvable:$true] %s60_s16  ;;  %s24_s18 = int_to_ptr.hbm [resolvable:$true] %s23_s18 }
   0x9   :  { %63 = dma.hbm_to_vmem [thread:$0]  %s59_s12, 512, %s61_s16, [#allocation9]  }
   0xa   :  { %s47_s3 = sshll.u32 %s4299_s2, 4  ;;  %s4151_s21 = smov [#allocation2]   ;;  %s48_s3 = int_to_ptr.hbm [resolvable:$true] %s47_s3 }
   0xb   :  { %s25_s22 = sshll.u32 %s4151_s21, 4  ;;  %s4152_s23 = smov [#allocation7]   ;;  %s26_s22 = int_to_ptr.vmem [resolvable:$true] %s25_s22 }
   0xc   :  { %28 = dma.hbm_to_vmem [thread:$0]  %s24_s18, 64, %s26_s22, [#allocation3]  }
   0xd   :  { %s49_s24 = sshll.u32 %s4152_s23, 4  ;;  %s68_s27 = sshll.u32 %s4301_s4, 4  ;;  %s50_s24 = int_to_ptr.vmem [resolvable:$true] %s49_s24  ;;  %s69_s27 = int_to_ptr.hbm [resolvable:$true] %s68_s27 }
   0xe   :  { %52 = dma.hbm_to_vmem [thread:$0]  %s48_s3, 16, %s50_s24, [#allocation6]  }
   0xf   :  { %s4153_s0 = smov [#allocation10]   ;;  %s83_s2 = sshll.u32 %s4303_s6, 4  ;;  %s84_s2 = int_to_ptr.hbm [resolvable:$true] %s83_s2 }
  0x10   :  { %s70_s28 = sshll.u32 %s4153_s0, 4  ;;  %s4154_s9 = smov 256   ;;  %s71_s28 = int_to_ptr.vmem [resolvable:$true] %s70_s28 }
  0x11   :  { %s4155_s10 = smov 16   ;;  %s4156_s11 = smov [#allocation11]  }
  0x12   :  { %76 = dma.hbm_to_vmem [thread:$0]  %s69_s27, 32768, %s71_s28, [#allocation9], %s4154_s9, %s4154_s9, %s4155_s10  }
  0x13   :  { %s85_s12 = sshll.u32 %s4156_s11, 4  ;;  %s86_s12 = int_to_ptr.vmem [resolvable:$true] %s85_s12 }
  0x14   :  { %91 = dma.hbm_to_vmem [thread:$0]  %s84_s2, 4096, %s86_s12, [#allocation12], %s4148_s13, %s4148_s13, %s4149_s14  }
  0x15   :  { %4137 = dma.done.wait [#allocation3], 64  }
  0x16   :  { %4138 = vsyncadd [#allocation3], 4294967232 }
  0x17   :  { %4139 = dma.done.wait [#allocation6], 272  }
  0x18   :  { %4140 = vsyncadd [#allocation6], 4294967024 }
  0x19   :  { %4141 = dma.done.wait [#allocation9], 33280  }
  0x1a   :  { %4142 = vsyncadd [#allocation9], 4294934016 }
  0x1b   :  { %4143 = dma.done.wait [#allocation12], 4096  }
  0x1c   :  { %4144 = vsyncadd [#allocation12], 4294963200  ;;  %v3657_v0 = vld [vmem:[#allocation5 + $0x8] sm:$0xff]  ;;  %v2618_v1 = vld [vmem:[#allocation10 + $0xe0] sm:$0xf]  ;;  %vm140_vm0 = vcmask 261120  }
  0x1d   :  { %v3688_v2 = vld [vmem:[#allocation10 + $0xec] sm:$0xf0]  ;;  %v2746_v4 = vld [vmem:[#allocation10 + $0x1e0] sm:$0xf]  ;;  %150 = vmatpush.bf16.msra.mxu0 %v3657_v0  ;;  %s4157_s14 = smov [#allocation13]   ;;  %s2482_s1 = sshll.u32 %s4305_s8, 4  ;;  %s2483_s1 = int_to_ptr.hbm [resolvable:$true] %s2482_s1 }
  0x1e   :  { %v2619_v3 = vor.u32 %v3688_v2, %v2618_v1  ;;  %v3720_v5 = vld [vmem:[#allocation10 + $0x1ec] sm:$0xf0]  ;;  %v2874_v6 = vld [vmem:[#allocation10 + $0x2e0] sm:$0xf]  ;;  %s2480_s15 = sshll.u32 %s4157_s14, 4  ;;  %s2481_s15 = int_to_ptr.vmem [resolvable:$true] %s2480_s15 }
  0x1f   :  { %v2747_v7 = vor.u32 %v3720_v5, %v2746_v4  ;;  %v3752_v8 = vld [vmem:[#allocation10 + $0x2ec] sm:$0xf0]  ;;  %v2602_v10 = vld [vmem:[#allocation10 + $0xc0] sm:$0xf] }
  0x20   :  { %v3656_v9 = vld [vmem:[#allocation5] sm:$0xff]  ;;  %1736 = vmatpush.bf16.msra.mxu1 %v2619_v3  ;;  %v2875_v11 = vor.u32 %v3752_v8, %v2874_v6  ;;  %v2730_v13 = vld [vmem:[#allocation10 + $0x1c0] sm:$0xf] }
  0x21   :  { %v3684_v12 = vld [vmem:[#allocation10 + $0xcc] sm:$0xf0]  ;;  %1749 = vmatpush.bf16.msra.mxu2 %v2747_v7  ;;  %v2858_v17 = vld [vmem:[#allocation10 + $0x2c0] sm:$0xf]  ;;  %151 = vmatpush.bf16.msra.mxu0 %v3656_v9 }
  0x22   :  { %v3716_v14 = vld [vmem:[#allocation10 + $0x1cc] sm:$0xf0]  ;;  %v2603_v15 = vor.u32 %v3684_v12, %v2602_v10  ;;  %v3002_v19 = vld [vmem:[#allocation10 + $0x3e0] sm:$0xf]  ;;  %1762 = vmatpush.bf16.msra.mxu3 %v2875_v11 }
  0x23   :  { %v2731_v16 = vor.u32 %v3716_v14, %v2730_v13  ;;  %v3748_v18 = vld [vmem:[#allocation10 + $0x2cc] sm:$0xf0]  ;;  %v2586_v22 = vld [vmem:[#allocation10 + $0xa0] sm:$0xf] }
  0x24   :  { %v2859_v20 = vor.u32 %v3748_v18, %v2858_v17  ;;  %v3784_v21 = vld [vmem:[#allocation10 + $0x3ec] sm:$0xf0]  ;;  %v2714_v25 = vld [vmem:[#allocation10 + $0x1a0] sm:$0xf]  ;;  %1737 = vmatpush.bf16.msra.mxu1 %v2603_v15  ;;  %v119_v18 = vld [vmem:[#allocation2] sm:$0xf] }
  0x25   :  { %v3680_v23 = vld [vmem:[#allocation10 + $0xac] sm:$0xf0]  ;;  %v3003_v24 = vor.u32 %v3784_v21, %v3002_v19  ;;  %v2842_v27 = vld [vmem:[#allocation10 + $0x2a0] sm:$0xf]  ;;  %1750 = vmatpush.bf16.msra.mxu2 %v2731_v16  ;;  %2503 = vmatmul.msk.bf16.vlgmr.msra.gmra.mxu0 %vm140_vm0, %v119_v18 }
  0x26   :  { %v3712_v26 = vld [vmem:[#allocation10 + $0x1ac] sm:$0xf0]  ;;  %v2587_v28 = vor.u32 %v3680_v23, %v2586_v22  ;;  %v2986_v30 = vld [vmem:[#allocation10 + $0x3c0] sm:$0xf]  ;;  %1763 = vmatpush.bf16.msra.mxu3 %v2859_v20 }
  0x27   :  { %v3744_v29 = vld [vmem:[#allocation10 + $0x2ac] sm:$0xf0]  ;;  %1775 = vmatpush.bf16.msrb.mxu0 %v3003_v24  ;;  %v2715_v32 = vor.u32 %v3712_v26, %v2714_v25  ;;  %v2570_v34 = vld [vmem:[#allocation10 + $0x80] sm:$0xf] }
  0x28   :  { %v3780_v31 = vld [vmem:[#allocation10 + $0x3cc] sm:$0xf0]  ;;  %v2843_v36 = vor.u32 %v3744_v29, %v2842_v27  ;;  %v2698_v37 = vld [vmem:[#allocation10 + $0x180] sm:$0xf]  ;;  %1738 = vmatpush.bf16.msra.mxu1 %v2587_v28 }
  0x29   :  { %v2987_v33 = vor.u32 %v3780_v31, %v2986_v30  ;;  %v3676_v35 = vld [vmem:[#allocation10 + $0x8c] sm:$0xf0]  ;;  %v2826_v39 = vld [vmem:[#allocation10 + $0x280] sm:$0xf]  ;;  %1751 = vmatpush.bf16.msra.mxu2 %v2715_v32 }
  0x2a   :  { %v3708_v38 = vld [vmem:[#allocation10 + $0x18c] sm:$0xf0]  ;;  %v2970_v41 = vld [vmem:[#allocation10 + $0x3a0] sm:$0xf]  ;;  %v2571_v43 = vor.u32 %v3676_v35, %v2570_v34  ;;  %1764 = vmatpush.bf16.msra.mxu3 %v2843_v36 }
  0x2b   :  { %v3740_v40 = vld [vmem:[#allocation10 + $0x28c] sm:$0xf0]  ;;  %1776 = vmatpush.bf16.msrb.mxu0 %v2987_v33  ;;  %v2699_v44 = vor.u32 %v3708_v38, %v2698_v37  ;;  %v2554_v46 = vld [vmem:[#allocation10 + $0x60] sm:$0xf] }
  0x2c   :  { %v3776_v42 = vld [vmem:[#allocation10 + $0x3ac] sm:$0xf0]  ;;  %v2682_v48 = vld [vmem:[#allocation10 + $0x160] sm:$0xf]  ;;  %v2827_v49 = vor.u32 %v3740_v40, %v2826_v39  ;;  %1739 = vmatpush.bf16.msra.mxu1 %v2571_v43 }
  0x2d   :  { %v2971_v45 = vor.u32 %v3776_v42, %v2970_v41  ;;  %v3672_v47 = vld [vmem:[#allocation10 + $0x6c] sm:$0xf0]  ;;  %v2954_v51 = vld [vmem:[#allocation10 + $0x380] sm:$0xf]  ;;  %1752 = vmatpush.bf16.msra.mxu2 %v2699_v44 }
  0x2e   :  { %v3704_v50 = vld [vmem:[#allocation10 + $0x16c] sm:$0xf0]  ;;  %v2810_v53 = vld [vmem:[#allocation10 + $0x260] sm:$0xf]  ;;  %v2555_v55 = vor.u32 %v3672_v47, %v2554_v46  ;;  %1765 = vmatpush.bf16.msra.mxu3 %v2827_v49 }
  0x2f   :  { %v3772_v52 = vld [vmem:[#allocation10 + $0x38c] sm:$0xf0]  ;;  %1777 = vmatpush.bf16.msrb.mxu0 %v2971_v45  ;;  %v2683_v56 = vor.u32 %v3704_v50, %v2682_v48  ;;  %v2538_v58 = vld [vmem:[#allocation10 + $0x40] sm:$0xf] }
  0x30   :  { %v3736_v54 = vld [vmem:[#allocation10 + $0x26c] sm:$0xf0]  ;;  %v2955_v57 = vor.u32 %v3772_v52, %v2954_v51  ;;  %v2666_v60 = vld [vmem:[#allocation10 + $0x140] sm:$0xf]  ;;  %1740 = vmatpush.bf16.msra.mxu1 %v2555_v55 }
  0x31   :  { %v3668_v59 = vld [vmem:[#allocation10 + $0x4c] sm:$0xf0]  ;;  %v2811_v61 = vor.u32 %v3736_v54, %v2810_v53  ;;  %v2938_v63 = vld [vmem:[#allocation10 + $0x360] sm:$0xf]  ;;  %1753 = vmatpush.bf16.msra.mxu2 %v2683_v56 }
  0x32   :  { %v3700_v62 = vld [vmem:[#allocation10 + $0x14c] sm:$0xf0]  ;;  %v2794_v1 = vld [vmem:[#allocation10 + $0x240] sm:$0xf]  ;;  %v2539_v3 = vor.u32 %v3668_v59, %v2538_v58 }
  0x33   :  { %v3768_v0 = vld [vmem:[#allocation10 + $0x36c] sm:$0xf0]  ;;  %1778 = vmatpush.bf16.msrb.mxu0 %v2955_v57  ;;  %v2667_v4 = vor.u32 %v3700_v62, %v2666_v60  ;;  %v2522_v6 = vld [vmem:[#allocation10 + $0x20] sm:$0xf]  ;;  %1766 = vmatpush.bf16.msra.mxu3 %v2811_v61 }
  0x34   :  { %v3732_v2 = vld [vmem:[#allocation10 + $0x24c] sm:$0xf0]  ;;  %v2939_v5 = vor.u32 %v3768_v0, %v2938_v63  ;;  %v2650_v8 = vld [vmem:[#allocation10 + $0x120] sm:$0xf]  ;;  %1741 = vmatpush.bf16.msra.mxu1 %v2539_v3 }
  0x35   :  { %v3664_v7 = vld [vmem:[#allocation10 + $0x2c] sm:$0xf0]  ;;  %v2795_v9 = vor.u32 %v3732_v2, %v2794_v1  ;;  %v2922_v11 = vld [vmem:[#allocation10 + $0x340] sm:$0xf]  ;;  %1754 = vmatpush.bf16.msra.mxu2 %v2667_v4 }
  0x36   :  { %v3696_v10 = vld [vmem:[#allocation10 + $0x12c] sm:$0xf0]  ;;  %v2778_v13 = vld [vmem:[#allocation10 + $0x220] sm:$0xf]  ;;  %v2523_v15 = vor.u32 %v3664_v7, %v2522_v6 }
  0x37   :  { %v3764_v12 = vld [vmem:[#allocation10 + $0x34c] sm:$0xf0]  ;;  %v2506_v16 = vld [vmem:[#allocation10] sm:$0xf]  ;;  %1779 = vmatpush.bf16.msrb.mxu0 %v2939_v5  ;;  %v2651_v19 = vor.u32 %v3696_v10, %v2650_v8  ;;  %1767 = vmatpush.bf16.msra.mxu3 %v2795_v9 }
  0x38   :  { %v3728_v14 = vld [vmem:[#allocation10 + $0x22c] sm:$0xf0]  ;;  %v2923_v20 = vor.u32 %v3764_v12, %v2922_v11  ;;  %v2634_v21 = vld [vmem:[#allocation10 + $0x100] sm:$0xf]  ;;  %1742 = vmatpush.bf16.msra.mxu1 %v2523_v15  ;;  %v159_v11 = vld [vmem:[#allocation8 + $0x8] sm:$0xff] }
  0x39   :  { %v3660_v17 = vld [vmem:[#allocation10 + $0xc] sm:$0xf0]  ;;  %v2762_v23 = vld [vmem:[#allocation10 + $0x200] sm:$0xf]  ;;  %v2779_v24 = vor.u32 %v3728_v14, %v2778_v13  ;;  %1755 = vmatpush.bf16.msra.mxu2 %v2651_v19 }
  0x3a   :  { %v3692_v22 = vld [vmem:[#allocation10 + $0x10c] sm:$0xf0]  ;;  %v2906_v26 = vld [vmem:[#allocation10 + $0x320] sm:$0xf]  ;;  %v2507_v31 = vor.u32 %v3660_v17, %v2506_v16  ;;  %v434_v16 = vunpack.c.l.b16 %v159_v11  ;;  %v435_v17 = vunpack.c.h.b16 %v159_v11  ;;  %v2748_v11 = vld [vmem:[#allocation10 + $0x1f0] sm:$0xf0] }
  0x3b   :  { %v3724_v25 = vld [vmem:[#allocation10 + $0x20c] sm:$0xf0]  ;;  %v3130_v28 = vld [vmem:[#allocation10 + $0x4e0] sm:$0xf]  ;;  %1780 = vmatpush.bf16.msrb.mxu0 %v2923_v20  ;;  %v2635_v35 = vor.u32 %v3692_v22, %v2634_v21  ;;  %1768 = vmatpush.bf16.msra.mxu3 %v2779_v24 }
  0x3c   :  { %v3760_v27 = vld [vmem:[#allocation10 + $0x32c] sm:$0xf0]  ;;  %v3258_v30 = vld [vmem:[#allocation10 + $0x5e0] sm:$0xf]  ;;  %v2763_v38 = vor.u32 %v3724_v25, %v2762_v23  ;;  %1743 = vmatpush.bf16.msra.mxu1 %v2507_v31  ;;  %v4232_v24 = vpack.c.b16 %v434_v16, %v434_v16  ;;  %v2876_v16 = vld [vmem:[#allocation10 + $0x2f0] sm:$0xf0] }
  0x3d   :  { %v3816_v29 = vld [vmem:[#allocation10 + $0x4ec] sm:$0xf0]  ;;  %v3386_v33 = vld [vmem:[#allocation10 + $0x6e0] sm:$0xf]  ;;  %v2907_v36 = vor.u32 %v3760_v27, %v2906_v26  ;;  %1756 = vmatpush.bf16.msra.mxu2 %v2635_v35 }
  0x3e   :  { %v3848_v32 = vld [vmem:[#allocation10 + $0x5ec] sm:$0xf0]  ;;  %v2890_v37 = vld [vmem:[#allocation10 + $0x300] sm:$0xf]  ;;  %v3131_v39 = vor.u32 %v3816_v29, %v3130_v28 }
  0x3f   :  { %v3880_v34 = vld [vmem:[#allocation10 + $0x6ec] sm:$0xf0]  ;;  %v3114_v41 = vld [vmem:[#allocation10 + $0x4c0] sm:$0xf]  ;;  %v3259_v43 = vor.u32 %v3848_v32, %v3258_v30  ;;  %1781 = vmatpush.bf16.msrb.mxu0 %v2907_v36  ;;  %1769 = vmatpush.bf16.msra.mxu3 %v2763_v38  ;;  %v4234_v30 = vpack.c.b16 %v435_v17, %v435_v17 }
  0x40   :  { %v3756_v40 = vld [vmem:[#allocation10 + $0x30c] sm:$0xf0]  ;;  %v3387_v44 = vor.u32 %v3880_v34, %v3386_v33  ;;  %v3242_v45 = vld [vmem:[#allocation10 + $0x5c0] sm:$0xf]  ;;  %1788 = vmatpush.bf16.msrb.mxu1 %v3131_v39 }
  0x41   :  { %v3812_v42 = vld [vmem:[#allocation10 + $0x4cc] sm:$0xf0]  ;;  %v3514_v46 = vld [vmem:[#allocation10 + $0x7e0] sm:$0xf]  ;;  %v2891_v51 = vor.u32 %v3756_v40, %v2890_v37  ;;  %1801 = vmatpush.bf16.msrb.mxu2 %v3259_v43 }
  0x42   :  { %v3912_v47 = vld [vmem:[#allocation10 + $0x7ec] sm:$0xf0]  ;;  %v3370_v49 = vld [vmem:[#allocation10 + $0x6c0] sm:$0xf]  ;;  %v3115_v52 = vor.u32 %v3812_v42, %v3114_v41  ;;  %1770 = vmatmul.bf16.vlgmr.msra.gmra.mxu3 %v4232_v24 }
  0x43   :  { %v3844_v48 = vld [vmem:[#allocation10 + $0x5cc] sm:$0xf0]  ;;  %v3515_v53 = vor.u32 %v3912_v47, %v3514_v46  ;;  %v3098_v54 = vld [vmem:[#allocation10 + $0x4a0] sm:$0xf]  ;;  %1814 = vmatpush.bf16.msrb.mxu3 %v3387_v44  ;;  %1782 = vmatpush.bf16.msrb.mxu0 %v2891_v51 }
  0x44   :  { %v3876_v50 = vld [vmem:[#allocation10 + $0x6cc] sm:$0xf0]  ;;  %v3243_v56 = vor.u32 %v3844_v48, %v3242_v45  ;;  %v3226_v58 = vld [vmem:[#allocation10 + $0x5a0] sm:$0xf]  ;;  %1789 = vmatpush.bf16.msrb.mxu1 %v3115_v52 }
  0x45   :  { %v3808_v55 = vld [vmem:[#allocation10 + $0x4ac] sm:$0xf0]  ;;  %v3371_v57 = vor.u32 %v3876_v50, %v3370_v49  ;;  %v3498_v59 = vld [vmem:[#allocation10 + $0x7c0] sm:$0xf] }
  0x46   :  { %v3908_v60 = vld [vmem:[#allocation10 + $0x7cc] sm:$0xf0]  ;;  %v3354_v62 = vld [vmem:[#allocation10 + $0x6a0] sm:$0xf]  ;;  %v3099_v1 = vor.u32 %v3808_v55, %v3098_v54  ;;  %1802 = vmatpush.bf16.msrb.mxu2 %v3243_v56  ;;  %1783 = vmatmul.bf16.vlgmr.msrb.gmra.mxu0 %v4234_v30 }
  0x47   :  { %v3840_v61 = vld [vmem:[#allocation10 + $0x5ac] sm:$0xf0]  ;;  %v3082_v0 = vld [vmem:[#allocation10 + $0x480] sm:$0xf]  ;;  %1827 = vmatpush.bf16.msra.mxu0 %v3515_v53  ;;  %v3499_v2 = vor.u32 %v3908_v60, %v3498_v59  ;;  %1815 = vmatpush.bf16.msrb.mxu3 %v3371_v57 }
  0x48   :  { %v3872_v63 = vld [vmem:[#allocation10 + $0x6ac] sm:$0xf0]  ;;  %v3210_v4 = vld [vmem:[#allocation10 + $0x580] sm:$0xf]  ;;  %v3227_v6 = vor.u32 %v3840_v61, %v3226_v58  ;;  %1790 = vmatpush.bf16.msrb.mxu1 %v3099_v1 }
  0x49   :  { %v3804_v3 = vld [vmem:[#allocation10 + $0x48c] sm:$0xf0]  ;;  %v158_v5 = vld [vmem:[#allocation8] sm:$0xff]  ;;  %v3355_v7 = vor.u32 %v3872_v63, %v3354_v62 }
  0x4a   :  { %v3482_v8 = vld [vmem:[#allocation10 + $0x7a0] sm:$0xf]  ;;  %v3904_v9 = vld [vmem:[#allocation10 + $0x7ac] sm:$0xf0]  ;;  %v433_v10 = vunpack.c.h.b16 %v158_v5  ;;  %v432_v12 = vunpack.c.l.b16 %v158_v5  ;;  %v3083_v20 = vor.u32 %v3804_v3, %v3082_v0  ;;  %1803 = vmatpush.bf16.msrb.mxu2 %v3227_v6 }
  0x4b   :  { %v3836_v13 = vld [vmem:[#allocation10 + $0x58c] sm:$0xf0]  ;;  %v3338_v14 = vld [vmem:[#allocation10 + $0x680] sm:$0xf]  ;;  %1828 = vmatpush.bf16.msra.mxu0 %v3499_v2  ;;  %v3483_v21 = vor.u32 %v3904_v9, %v3482_v8  ;;  %1816 = vmatpush.bf16.msrb.mxu3 %v3355_v7  ;;  %v3686_v7 = vld [vmem:[#allocation10 + $0xe4] sm:$0xf] }
  0x4c   :  { %v3868_v15 = vld [vmem:[#allocation10 + $0x68c] sm:$0xf0]  ;;  %v4228_v18 = vpack.c.b16 %v433_v10, %v433_v10  ;;  %v4230_v19 = vpack.c.b16 %v432_v12, %v432_v12  ;;  %v3066_v22 = vld [vmem:[#allocation10 + $0x460] sm:$0xf]  ;;  %v3211_v25 = vor.u32 %v3836_v13, %v3210_v4  ;;  %1791 = vmatpush.bf16.msrb.mxu1 %v3083_v20  ;;  %v161_v8 = vld [vmem:[#allocation8 + $0x18] sm:$0xff] }
  0x4d   :  { %v3800_v23 = vld [vmem:[#allocation10 + $0x46c] sm:$0xf0]  ;;  %v3339_v26 = vor.u32 %v3868_v15, %v3338_v14  ;;  %v3194_v27 = vld [vmem:[#allocation10 + $0x560] sm:$0xf]  ;;  %v2620_v9 = vld [vmem:[#allocation10 + $0xf0] sm:$0xf0] }
  0x4e   :  { %v3466_v28 = vld [vmem:[#allocation10 + $0x780] sm:$0xf]  ;;  %v3900_v29 = vld [vmem:[#allocation10 + $0x78c] sm:$0xf0]  ;;  %1757 = vmatmul.bf16.vlgmr.msra.gmra.mxu2 %v4228_v18  ;;  %1744 = vmatmul.bf16.vlgmr.msra.gmra.mxu1 %v4230_v19  ;;  %v3067_v34 = vor.u32 %v3800_v23, %v3066_v22  ;;  %v3718_v10 = vld [vmem:[#allocation10 + $0x1e4] sm:$0xf] }
  0x4f   :  { %v3832_v31 = vld [vmem:[#allocation10 + $0x56c] sm:$0xf0]  ;;  %v3322_v32 = vld [vmem:[#allocation10 + $0x660] sm:$0xf]  ;;  %1829 = vmatpush.bf16.msra.mxu0 %v3483_v21  ;;  %v3467_v35 = vor.u32 %v3900_v29, %v3466_v28  ;;  %1804 = vmatpush.bf16.msrb.mxu2 %v3211_v25  ;;  %v3750_v15 = vld [vmem:[#allocation10 + $0x2e4] sm:$0xf]  ;;  %v438_v25 = vunpack.c.l.b16 %v161_v8 }
  0x50   :  { %v3864_v33 = vld [vmem:[#allocation10 + $0x66c] sm:$0xf0]  ;;  %v3050_v36 = vld [vmem:[#allocation10 + $0x440] sm:$0xf]  ;;  %1817 = vmatpush.bf16.msrb.mxu3 %v3339_v26  ;;  %v3195_v38 = vor.u32 %v3832_v31, %v3194_v27  ;;  %1792 = vmatpush.bf16.msrb.mxu1 %v3067_v34  ;;  %v2623_v26 = vor.u32 %v3686_v7, %v2620_v9  ;;  %v2751_v27 = vor.u32 %v3718_v10, %v2748_v11  ;;  %v3682_v28 = vld [vmem:[#allocation10 + $0xc4] sm:$0xf] }
  0x51   :  { %v3796_v37 = vld [vmem:[#allocation10 + $0x44c] sm:$0xf0]  ;;  %v3323_v39 = vor.u32 %v3864_v33, %v3322_v32  ;;  %v3178_v40 = vld [vmem:[#allocation10 + $0x540] sm:$0xf]  ;;  %v3782_v29 = vld [vmem:[#allocation10 + $0x3e4] sm:$0xf]  ;;  %v2879_v32 = vor.u32 %v3750_v15, %v2876_v16 }
  0x52   :  { %v3450_v41 = vld [vmem:[#allocation10 + $0x760] sm:$0xf]  ;;  %v3896_v42 = vld [vmem:[#allocation10 + $0x76c] sm:$0xf0]  ;;  %v3051_v46 = vor.u32 %v3796_v37, %v3050_v36  ;;  %v3004_v31 = vld [vmem:[#allocation10 + $0x3f0] sm:$0xf0]  ;;  %v439_v37 = vunpack.c.h.b16 %v161_v8 }
  0x53   :  { %v3828_v43 = vld [vmem:[#allocation10 + $0x54c] sm:$0xf0]  ;;  %v3306_v44 = vld [vmem:[#allocation10 + $0x640] sm:$0xf]  ;;  %1830 = vmatpush.bf16.msra.mxu0 %v3467_v35  ;;  %v3451_v47 = vor.u32 %v3896_v42, %v3450_v41  ;;  %1805 = vmatpush.bf16.msrb.mxu2 %v3195_v38  ;;  %v2604_v33 = vld [vmem:[#allocation10 + $0xd0] sm:$0xf0]  ;;  %v3007_v42 = vor.u32 %v3782_v29, %v3004_v31 }
  0x54   :  { %v3860_v45 = vld [vmem:[#allocation10 + $0x64c] sm:$0xf0]  ;;  %v3034_v48 = vld [vmem:[#allocation10 + $0x420] sm:$0xf]  ;;  %1818 = vmatpush.bf16.msrb.mxu3 %v3323_v39  ;;  %v3179_v50 = vor.u32 %v3828_v43, %v3178_v40  ;;  %1793 = vmatpush.bf16.msrb.mxu1 %v3051_v46  ;;  %v3714_v34 = vld [vmem:[#allocation10 + $0x1c4] sm:$0xf]  ;;  %v4244_v43 = vpack.c.b16 %v438_v25, %v438_v25 }
  0x55   :  { %v3792_v49 = vld [vmem:[#allocation10 + $0x42c] sm:$0xf0]  ;;  %v3307_v51 = vor.u32 %v3860_v45, %v3306_v44  ;;  %v3162_v52 = vld [vmem:[#allocation10 + $0x520] sm:$0xf]  ;;  %v2732_v35 = vld [vmem:[#allocation10 + $0x1d0] sm:$0xf0]  ;;  %v2607_v44 = vor.u32 %v3682_v28, %v2604_v33 }
  0x56   :  { %v3434_v53 = vld [vmem:[#allocation10 + $0x740] sm:$0xf]  ;;  %v3892_v54 = vld [vmem:[#allocation10 + $0x74c] sm:$0xf0]  ;;  %v3035_v60 = vor.u32 %v3792_v49, %v3034_v48  ;;  %v3746_v39 = vld [vmem:[#allocation10 + $0x2c4] sm:$0xf]  ;;  %v2735_v45 = vor.u32 %v3714_v34, %v2732_v35 }
  0x57   :  { %v3824_v55 = vld [vmem:[#allocation10 + $0x52c] sm:$0xf0]  ;;  %v3290_v56 = vld [vmem:[#allocation10 + $0x620] sm:$0xf]  ;;  %1831 = vmatpush.bf16.msra.mxu0 %v3451_v47  ;;  %v3435_v61 = vor.u32 %v3892_v54, %v3434_v53  ;;  %1806 = vmatpush.bf16.msrb.mxu2 %v3179_v50  ;;  %v2860_v40 = vld [vmem:[#allocation10 + $0x2d0] sm:$0xf0]  ;;  %v4247_v53 = vpack.c.b16 %v439_v37, %v439_v37 }
  0x58   :  { %v3856_v57 = vld [vmem:[#allocation10 + $0x62c] sm:$0xf0]  ;;  %v3018_v58 = vld [vmem:[#allocation10 + $0x400] sm:$0xf]  ;;  %1819 = vmatpush.bf16.msrb.mxu3 %v3307_v51  ;;  %v3163_v1 = vor.u32 %v3824_v55, %v3162_v52  ;;  %1794 = vmatpush.bf16.msrb.mxu1 %v3035_v60  ;;  %v3678_v46 = vld [vmem:[#allocation10 + $0xa4] sm:$0xf]  ;;  %v2863_v49 = vor.u32 %v3746_v39, %v2860_v40 }
  0x59   :  { %v3788_v59 = vld [vmem:[#allocation10 + $0x40c] sm:$0xf0]  ;;  %v3146_v62 = vld [vmem:[#allocation10 + $0x500] sm:$0xf]  ;;  %v3291_v2 = vor.u32 %v3856_v57, %v3290_v56  ;;  %v3778_v47 = vld [vmem:[#allocation10 + $0x3c4] sm:$0xf] }
  0x5a   :  { %v3820_v63 = vld [vmem:[#allocation10 + $0x50c] sm:$0xf0]  ;;  %v3274_v0 = vld [vmem:[#allocation10 + $0x600] sm:$0xf]  ;;  %v3019_v13 = vor.u32 %v3788_v59, %v3018_v58  ;;  %v2988_v48 = vld [vmem:[#allocation10 + $0x3d0] sm:$0xf0] }
  0x5b   :  { %v3418_v3 = vld [vmem:[#allocation10 + $0x720] sm:$0xf]  ;;  %v3888_v4 = vld [vmem:[#allocation10 + $0x72c] sm:$0xf0]  ;;  %1832 = vmatpush.bf16.msra.mxu0 %v3435_v61  ;;  %1807 = vmatpush.bf16.msrb.mxu2 %v3163_v1  ;;  %v3147_v20 = vor.u32 %v3820_v63, %v3146_v62  ;;  %v2588_v50 = vld [vmem:[#allocation10 + $0xb0] sm:$0xf0]  ;;  %v2991_v56 = vor.u32 %v3778_v47, %v2988_v48 }
  0x5c   :  { %v160_v5 = vld [vmem:[#allocation8 + $0x10] sm:$0xff]  ;;  %v3419_v14 = vor.u32 %v3888_v4, %v3418_v3  ;;  %1820 = vmatpush.bf16.msrb.mxu3 %v3291_v2  ;;  %v3402_v22 = vld [vmem:[#allocation10 + $0x700] sm:$0xf]  ;;  %1795 = vmatpush.bf16.msrb.mxu1 %v3019_v13  ;;  %v3710_v51 = vld [vmem:[#allocation10 + $0x1a4] sm:$0xf]  ;;  %v2591_v57 = vor.u32 %v3678_v46, %v2588_v50 }
  0x5d   :  { %v3852_v6 = vld [vmem:[#allocation10 + $0x60c] sm:$0xf0]  ;;  %v436_v12 = vunpack.c.l.b16 %v160_v5  ;;  %v437_v17 = vunpack.c.h.b16 %v160_v5  ;;  %v2716_v52 = vld [vmem:[#allocation10 + $0x1b0] sm:$0xf0]  ;;  %v3742_v54 = vld [vmem:[#allocation10 + $0x2a4] sm:$0xf] }
  0x5e   :  { %v3275_v21 = vor.u32 %v3852_v6, %v3274_v0  ;;  %v3884_v23 = vld [vmem:[#allocation10 + $0x70c] sm:$0xf0]  ;;  %v2844_v55 = vld [vmem:[#allocation10 + $0x2b0] sm:$0xf0]  ;;  %v2719_v58 = vor.u32 %v3710_v51, %v2716_v52  ;;  %v3674_v59 = vld [vmem:[#allocation10 + $0x84] sm:$0xf] }
  0x5f   :  { %v4240_v36 = vpack.c.b16 %v436_v12, %v436_v12  ;;  %1833 = vmatpush.bf16.msra.mxu0 %v3419_v14  ;;  %v3403_v38 = vor.u32 %v3884_v23, %v3402_v22  ;;  %v4242_v41 = vpack.c.b16 %v437_v17, %v437_v17  ;;  %1808 = vmatpush.bf16.msrb.mxu2 %v3147_v20  ;;  %v3774_v60 = vld [vmem:[#allocation10 + $0x3a4] sm:$0xf]  ;;  %v2972_v61 = vld [vmem:[#allocation10 + $0x3b0] sm:$0xf0] }
  0x60   :  { %1821 = vmatpush.bf16.msrb.mxu3 %v3275_v21  ;;  %1840 = vmatpush.bf16.msra.mxu1 %v2623_v26  ;;  %v2847_v62 = vor.u32 %v3742_v54, %v2844_v55  ;;  %v2572_v63 = vld [vmem:[#allocation10 + $0x90] sm:$0xf0]  ;;  %v3706_v0 = vld [vmem:[#allocation10 + $0x184] sm:$0xf]  ;;  %v2975_v4 = vor.u32 %v3774_v60, %v2972_v61 }
  0x61   :  { %1796 = vmatmul.bf16.vlgmr.msrb.gmra.mxu1 %v4240_v36  ;;  %v2700_v1 = vld [vmem:[#allocation10 + $0x190] sm:$0xf0]  ;;  %v3738_v2 = vld [vmem:[#allocation10 + $0x284] sm:$0xf]  ;;  %v2575_v5 = vor.u32 %v3674_v59, %v2572_v63 }
  0x62   :  { %1809 = vmatmul.bf16.vlgmr.msrb.gmra.mxu2 %v4242_v41  ;;  %v2828_v3 = vld [vmem:[#allocation10 + $0x290] sm:$0xf0]  ;;  %v2703_v6 = vor.u32 %v3706_v0, %v2700_v1  ;;  %v3670_v7 = vld [vmem:[#allocation10 + $0x64] sm:$0xf] }
  0x63   :  { %1853 = vmatpush.bf16.msra.mxu2 %v2751_v27  ;;  %1834 = vmatpush.bf16.msra.mxu0 %v3403_v38  ;;  %v3770_v8 = vld [vmem:[#allocation10 + $0x384] sm:$0xf]  ;;  %v2956_v9 = vld [vmem:[#allocation10 + $0x390] sm:$0xf0]  ;;  %v2831_v10 = vor.u32 %v3738_v2, %v2828_v3 }
  0x64   :  { %1866 = vmatpush.bf16.msra.mxu3 %v2879_v32  ;;  %1841 = vmatpush.bf16.msra.mxu1 %v2607_v44  ;;  %v2556_v11 = vld [vmem:[#allocation10 + $0x70] sm:$0xf0]  ;;  %v3702_v12 = vld [vmem:[#allocation10 + $0x164] sm:$0xf]  ;;  %v2959_v16 = vor.u32 %v3770_v8, %v2956_v9 }
  0x65   :  { %1822 = vmatmul.bf16.vlgmr.msrb.gmra.mxu3 %v4244_v43  ;;  %v2684_v13 = vld [vmem:[#allocation10 + $0x170] sm:$0xf0]  ;;  %v3734_v14 = vld [vmem:[#allocation10 + $0x264] sm:$0xf]  ;;  %v2559_v17 = vor.u32 %v3670_v7, %v2556_v11 }
  0x66   :  { %1835 = vmatmul.bf16.vlgmr.msra.gmra.mxu0 %v4247_v53  ;;  %v2812_v15 = vld [vmem:[#allocation10 + $0x270] sm:$0xf0]  ;;  %v2687_v20 = vor.u32 %v3702_v12, %v2684_v13  ;;  %v3666_v21 = vld [vmem:[#allocation10 + $0x44] sm:$0xf] }
  0x67   :  { %1879 = vmatpush.bf16.msrb.mxu0 %v3007_v42  ;;  %1854 = vmatpush.bf16.msra.mxu2 %v2735_v45  ;;  %v3766_v22 = vld [vmem:[#allocation10 + $0x364] sm:$0xf]  ;;  %v2940_v23 = vld [vmem:[#allocation10 + $0x370] sm:$0xf0]  ;;  %v2815_v25 = vor.u32 %v3734_v14, %v2812_v15 }
  0x68   :  { %1867 = vmatpush.bf16.msra.mxu3 %v2863_v49  ;;  %1842 = vmatpush.bf16.msra.mxu1 %v2591_v57  ;;  %v2540_v26 = vld [vmem:[#allocation10 + $0x50] sm:$0xf0]  ;;  %v3698_v27 = vld [vmem:[#allocation10 + $0x144] sm:$0xf]  ;;  %v2943_v32 = vor.u32 %v3766_v22, %v2940_v23 }
  0x69   :  { %v2668_v28 = vld [vmem:[#allocation10 + $0x150] sm:$0xf0]  ;;  %v3730_v29 = vld [vmem:[#allocation10 + $0x244] sm:$0xf]  ;;  %v2543_v33 = vor.u32 %v3666_v21, %v2540_v26 }
  0x6a   :  { %v2796_v31 = vld [vmem:[#allocation10 + $0x250] sm:$0xf0]  ;;  %v2671_v34 = vor.u32 %v3698_v27, %v2668_v28  ;;  %v3662_v35 = vld [vmem:[#allocation10 + $0x24] sm:$0xf] }
  0x6b   :  { %1880 = vmatpush.bf16.msrb.mxu0 %v2991_v56  ;;  %1855 = vmatpush.bf16.msra.mxu2 %v2719_v58  ;;  %v3762_v37 = vld [vmem:[#allocation10 + $0x344] sm:$0xf]  ;;  %v2924_v38 = vld [vmem:[#allocation10 + $0x350] sm:$0xf0]  ;;  %v2799_v39 = vor.u32 %v3730_v29, %v2796_v31 }
  0x6c   :  { %1868 = vmatpush.bf16.msra.mxu3 %v2847_v62  ;;  %1843 = vmatpush.bf16.msra.mxu1 %v2575_v5  ;;  %v2524_v40 = vld [vmem:[#allocation10 + $0x30] sm:$0xf0]  ;;  %v3694_v42 = vld [vmem:[#allocation10 + $0x124] sm:$0xf]  ;;  %v2927_v47 = vor.u32 %v3762_v37, %v2924_v38 }
  0x6d   :  { %v2652_v44 = vld [vmem:[#allocation10 + $0x130] sm:$0xf0]  ;;  %v3726_v45 = vld [vmem:[#allocation10 + $0x224] sm:$0xf]  ;;  %v2527_v52 = vor.u32 %v3662_v35, %v2524_v40 }
  0x6e   :  { %v2780_v46 = vld [vmem:[#allocation10 + $0x230] sm:$0xf0]  ;;  %v3658_v48 = vld [vmem:[#allocation10 + $0x4] sm:$0xf]  ;;  %v2655_v54 = vor.u32 %v3694_v42, %v2652_v44 }
  0x6f   :  { %1881 = vmatpush.bf16.msrb.mxu0 %v2975_v4  ;;  %1856 = vmatpush.bf16.msra.mxu2 %v2703_v6  ;;  %v2508_v49 = vld [vmem:[#allocation10 + $0x10] sm:$0xf0]  ;;  %v3690_v50 = vld [vmem:[#allocation10 + $0x104] sm:$0xf]  ;;  %v2783_v58 = vor.u32 %v3726_v45, %v2780_v46 }
  0x70   :  { %1869 = vmatpush.bf16.msra.mxu3 %v2831_v10  ;;  %1844 = vmatpush.bf16.msra.mxu1 %v2559_v17  ;;  %v2636_v51 = vld [vmem:[#allocation10 + $0x110] sm:$0xf0]  ;;  %v3722_v55 = vld [vmem:[#allocation10 + $0x204] sm:$0xf]  ;;  %v2511_v3 = vor.u32 %v3658_v48, %v2508_v49 }
  0x71   :  { %v3758_v56 = vld [vmem:[#allocation10 + $0x324] sm:$0xf]  ;;  %v2908_v57 = vld [vmem:[#allocation10 + $0x330] sm:$0xf0]  ;;  %v2639_v4 = vor.u32 %v3690_v50, %v2636_v51 }
  0x72   :  { %v2764_v59 = vld [vmem:[#allocation10 + $0x210] sm:$0xf0]  ;;  %v3814_v60 = vld [vmem:[#allocation10 + $0x4e4] sm:$0xf]  ;;  %v2911_v63 = vor.u32 %v3758_v56, %v2908_v57 }
  0x73   :  { %1882 = vmatpush.bf16.msrb.mxu0 %v2959_v16  ;;  %1857 = vmatpush.bf16.msra.mxu2 %v2687_v20  ;;  %v3132_v61 = vld [vmem:[#allocation10 + $0x4f0] sm:$0xf0]  ;;  %v3846_v62 = vld [vmem:[#allocation10 + $0x5e4] sm:$0xf]  ;;  %v2767_v7 = vor.u32 %v3722_v55, %v2764_v59 }
  0x74   :  { %1870 = vmatpush.bf16.msra.mxu3 %v2815_v25  ;;  %1845 = vmatpush.bf16.msra.mxu1 %v2543_v33  ;;  %v3260_v0 = vld [vmem:[#allocation10 + $0x5f0] sm:$0xf0]  ;;  %v3878_v1 = vld [vmem:[#allocation10 + $0x6e4] sm:$0xf]  ;;  %v3135_v8 = vor.u32 %v3814_v60, %v3132_v61 }
  0x75   :  { %v3388_v2 = vld [vmem:[#allocation10 + $0x6f0] sm:$0xf0]  ;;  %v3754_v5 = vld [vmem:[#allocation10 + $0x304] sm:$0xf]  ;;  %v3263_v11 = vor.u32 %v3846_v62, %v3260_v0 }
  0x76   :  { %v2892_v6 = vld [vmem:[#allocation10 + $0x310] sm:$0xf0]  ;;  %v3910_v9 = vld [vmem:[#allocation10 + $0x7e4] sm:$0xf]  ;;  %v3391_v12 = vor.u32 %v3878_v1, %v3388_v2 }
  0x77   :  { %1883 = vmatpush.bf16.msrb.mxu0 %v2943_v32  ;;  %1858 = vmatpush.bf16.msra.mxu2 %v2671_v34  ;;  %v3516_v10 = vld [vmem:[#allocation10 + $0x7f0] sm:$0xf0]  ;;  %v3810_v13 = vld [vmem:[#allocation10 + $0x4c4] sm:$0xf]  ;;  %v2895_v16 = vor.u32 %v3754_v5, %v2892_v6 }
  0x78   :  { %1871 = vmatpush.bf16.msra.mxu3 %v2799_v39  ;;  %1846 = vmatpush.bf16.msra.mxu1 %v2527_v52  ;;  %v3116_v14 = vld [vmem:[#allocation10 + $0x4d0] sm:$0xf0]  ;;  %v3842_v15 = vld [vmem:[#allocation10 + $0x5c4] sm:$0xf]  ;;  %v3519_v22 = vor.u32 %v3910_v9, %v3516_v10 }
  0x79   :  { %v3244_v17 = vld [vmem:[#allocation10 + $0x5d0] sm:$0xf0]  ;;  %v3874_v20 = vld [vmem:[#allocation10 + $0x6c4] sm:$0xf]  ;;  %v3119_v23 = vor.u32 %v3810_v13, %v3116_v14 }
  0x7a   :  { %v3372_v21 = vld [vmem:[#allocation10 + $0x6d0] sm:$0xf0]  ;;  %v3906_v25 = vld [vmem:[#allocation10 + $0x7c4] sm:$0xf]  ;;  %v3247_v27 = vor.u32 %v3842_v15, %v3244_v17 }
  0x7b   :  { %1884 = vmatpush.bf16.msrb.mxu0 %v2927_v47  ;;  %1859 = vmatpush.bf16.msra.mxu2 %v2655_v54  ;;  %v3500_v26 = vld [vmem:[#allocation10 + $0x7d0] sm:$0xf0]  ;;  %v3375_v28 = vor.u32 %v3874_v20, %v3372_v21  ;;  %v3806_v29 = vld [vmem:[#allocation10 + $0x4a4] sm:$0xf] }
  0x7c   :  { %1872 = vmatpush.bf16.msra.mxu3 %v2783_v58  ;;  %1847 = vmatpush.bf16.msra.mxu1 %v2511_v3  ;;  %v3100_v31 = vld [vmem:[#allocation10 + $0x4b0] sm:$0xf0]  ;;  %v3838_v32 = vld [vmem:[#allocation10 + $0x5a4] sm:$0xf]  ;;  %v3503_v37 = vor.u32 %v3906_v25, %v3500_v26 }
  0x7d   :  { %v3228_v33 = vld [vmem:[#allocation10 + $0x5b0] sm:$0xf0]  ;;  %v3870_v34 = vld [vmem:[#allocation10 + $0x6a4] sm:$0xf]  ;;  %v3103_v38 = vor.u32 %v3806_v29, %v3100_v31 }
  0x7e   :  { %v3356_v35 = vld [vmem:[#allocation10 + $0x6b0] sm:$0xf0]  ;;  %v3902_v39 = vld [vmem:[#allocation10 + $0x7a4] sm:$0xf]  ;;  %v3231_v42 = vor.u32 %v3838_v32, %v3228_v33 }
  0x7f   :  { %1885 = vmatpush.bf16.msrb.mxu0 %v2911_v63  ;;  %1860 = vmatpush.bf16.msra.mxu2 %v2639_v4  ;;  %v3484_v40 = vld [vmem:[#allocation10 + $0x7b0] sm:$0xf0]  ;;  %v3359_v44 = vor.u32 %v3870_v34, %v3356_v35  ;;  %v3802_v45 = vld [vmem:[#allocation10 + $0x484] sm:$0xf] }
  0x80   :  { %1873 = vmatpush.bf16.msra.mxu3 %v2767_v7  ;;  %1892 = vmatpush.bf16.msrb.mxu1 %v3135_v8  ;;  %v3084_v46 = vld [vmem:[#allocation10 + $0x490] sm:$0xf0]  ;;  %v3834_v47 = vld [vmem:[#allocation10 + $0x584] sm:$0xf]  ;;  %v3487_v51 = vor.u32 %v3902_v39, %v3484_v40 }
  0x81   :  { %v3212_v48 = vld [vmem:[#allocation10 + $0x590] sm:$0xf0]  ;;  %v3866_v49 = vld [vmem:[#allocation10 + $0x684] sm:$0xf]  ;;  %1848 = vmatmul.bf16.vlgmr.msra.gmra.mxu1 %v4230_v19  ;;  %v3087_v52 = vor.u32 %v3802_v45, %v3084_v46  ;;  %v2754_v46 = vld [vmem:[#allocation10 + $0x1e8] sm:$0xf] }
  0x82   :  { %1861 = vmatmul.bf16.vlgmr.msra.gmra.mxu2 %v4228_v18  ;;  %v3340_v50 = vld [vmem:[#allocation10 + $0x690] sm:$0xf0]  ;;  %v3898_v54 = vld [vmem:[#allocation10 + $0x784] sm:$0xf]  ;;  %v3215_v56 = vor.u32 %v3834_v47, %v3212_v48  ;;  %v3721_v47 = vld [vmem:[#allocation10 + $0x1f4] sm:$0xf0] }
  0x83   :  { %1905 = vmatpush.bf16.msrb.mxu2 %v3263_v11  ;;  %1886 = vmatpush.bf16.msrb.mxu0 %v2895_v16  ;;  %v3468_v55 = vld [vmem:[#allocation10 + $0x790] sm:$0xf0]  ;;  %v3343_v57 = vor.u32 %v3866_v49, %v3340_v50  ;;  %v3798_v58 = vld [vmem:[#allocation10 + $0x464] sm:$0xf]  ;;  %v2882_v48 = vld [vmem:[#allocation10 + $0x2e8] sm:$0xf] }
  0x84   :  { %1918 = vmatpush.bf16.msrb.mxu3 %v3391_v12  ;;  %1893 = vmatpush.bf16.msrb.mxu1 %v3119_v23  ;;  %v3068_v59 = vld [vmem:[#allocation10 + $0x470] sm:$0xf0]  ;;  %v3830_v60 = vld [vmem:[#allocation10 + $0x564] sm:$0xf]  ;;  %v3471_v0 = vor.u32 %v3898_v54, %v3468_v55  ;;  %v3753_v50 = vld [vmem:[#allocation10 + $0x2f4] sm:$0xf0] }
  0x85   :  { %1874 = vmatmul.bf16.vlgmr.msra.gmra.mxu3 %v4232_v24  ;;  %v3196_v61 = vld [vmem:[#allocation10 + $0x570] sm:$0xf0]  ;;  %v3862_v62 = vld [vmem:[#allocation10 + $0x664] sm:$0xf]  ;;  %v3071_v1 = vor.u32 %v3798_v58, %v3068_v59  ;;  %v2610_v58 = vld [vmem:[#allocation10 + $0xc8] sm:$0xf] }
  0x86   :  { %1887 = vmatmul.bf16.vlgmr.msrb.gmra.mxu0 %v4234_v30  ;;  %v3324_v63 = vld [vmem:[#allocation10 + $0x670] sm:$0xf0]  ;;  %v3894_v2 = vld [vmem:[#allocation10 + $0x764] sm:$0xf]  ;;  %v3199_v4 = vor.u32 %v3830_v60, %v3196_v61  ;;  %v3010_v59 = vld [vmem:[#allocation10 + $0x3e8] sm:$0xf]  ;;  %v2883_v61 = vor.u32 %v3753_v50, %v2882_v48 }
  0x87   :  { %1931 = vmatpush.bf16.msra.mxu0 %v3519_v22  ;;  %1906 = vmatpush.bf16.msrb.mxu2 %v3247_v27  ;;  %v3452_v3 = vld [vmem:[#allocation10 + $0x770] sm:$0xf0]  ;;  %v3327_v5 = vor.u32 %v3862_v62, %v3324_v63  ;;  %v3794_v6 = vld [vmem:[#allocation10 + $0x444] sm:$0xf]  ;;  %v3785_v60 = vld [vmem:[#allocation10 + $0x3f4] sm:$0xf0] }
  0x88   :  { %1919 = vmatpush.bf16.msrb.mxu3 %v3375_v28  ;;  %1894 = vmatpush.bf16.msrb.mxu1 %v3103_v38  ;;  %v3052_v7 = vld [vmem:[#allocation10 + $0x450] sm:$0xf0]  ;;  %v3826_v8 = vld [vmem:[#allocation10 + $0x544] sm:$0xf]  ;;  %v3455_v12 = vor.u32 %v3894_v2, %v3452_v3  ;;  %v3685_v63 = vld [vmem:[#allocation10 + $0xd4] sm:$0xf0] }
  0x89   :  { %v3180_v9 = vld [vmem:[#allocation10 + $0x550] sm:$0xf0]  ;;  %v3858_v10 = vld [vmem:[#allocation10 + $0x644] sm:$0xf]  ;;  %v3055_v13 = vor.u32 %v3794_v6, %v3052_v7  ;;  %v2866_v2 = vld [vmem:[#allocation10 + $0x2c8] sm:$0xf] }
  0x8a   :  { %v3308_v11 = vld [vmem:[#allocation10 + $0x650] sm:$0xf0]  ;;  %v3890_v14 = vld [vmem:[#allocation10 + $0x744] sm:$0xf]  ;;  %v3183_v16 = vor.u32 %v3826_v8, %v3180_v9  ;;  %v3749_v3 = vld [vmem:[#allocation10 + $0x2d4] sm:$0xf0] }
  0x8b   :  { %1932 = vmatpush.bf16.msra.mxu0 %v3503_v37  ;;  %1907 = vmatpush.bf16.msrb.mxu2 %v3231_v42  ;;  %v3436_v15 = vld [vmem:[#allocation10 + $0x750] sm:$0xf0]  ;;  %v3311_v17 = vor.u32 %v3858_v10, %v3308_v11  ;;  %v3790_v20 = vld [vmem:[#allocation10 + $0x424] sm:$0xf]  ;;  %v2626_v42 = vld [vmem:[#allocation10 + $0xe8] sm:$0xf]  ;;  %v2867_v10 = vor.u32 %v3749_v3, %v2866_v2 }
  0x8c   :  { %1920 = vmatpush.bf16.msrb.mxu3 %v3359_v44  ;;  %1895 = vmatpush.bf16.msrb.mxu1 %v3087_v52  ;;  %v3036_v21 = vld [vmem:[#allocation10 + $0x430] sm:$0xf0]  ;;  %v3822_v22 = vld [vmem:[#allocation10 + $0x524] sm:$0xf]  ;;  %v3439_v27 = vor.u32 %v3890_v14, %v3436_v15  ;;  %v3689_v44 = vld [vmem:[#allocation10 + $0xf4] sm:$0xf0] }
  0x8d   :  { %v3164_v23 = vld [vmem:[#allocation10 + $0x530] sm:$0xf0]  ;;  %v3854_v25 = vld [vmem:[#allocation10 + $0x624] sm:$0xf]  ;;  %v3039_v29 = vor.u32 %v3790_v20, %v3036_v21  ;;  %v2594_v7 = vld [vmem:[#allocation10 + $0xa8] sm:$0xf] }
  0x8e   :  { %v3292_v26 = vld [vmem:[#allocation10 + $0x630] sm:$0xf0]  ;;  %v3786_v28 = vld [vmem:[#allocation10 + $0x404] sm:$0xf]  ;;  %v3167_v34 = vor.u32 %v3822_v22, %v3164_v23  ;;  %v2994_v8 = vld [vmem:[#allocation10 + $0x3c8] sm:$0xf] }
  0x8f   :  { %1933 = vmatpush.bf16.msra.mxu0 %v3487_v51  ;;  %1908 = vmatpush.bf16.msrb.mxu2 %v3215_v56  ;;  %v3020_v31 = vld [vmem:[#allocation10 + $0x410] sm:$0xf0]  ;;  %v3886_v32 = vld [vmem:[#allocation10 + $0x724] sm:$0xf]  ;;  %v3295_v35 = vor.u32 %v3854_v25, %v3292_v26  ;;  %v2627_v56 = vor.u32 %v3689_v44, %v2626_v42  ;;  %v3781_v9 = vld [vmem:[#allocation10 + $0x3d4] sm:$0xf0] }
  0x90   :  { %1921 = vmatpush.bf16.msrb.mxu3 %v3343_v57  ;;  %1896 = vmatpush.bf16.msrb.mxu1 %v3071_v1  ;;  %v3420_v33 = vld [vmem:[#allocation10 + $0x730] sm:$0xf0]  ;;  %v3818_v37 = vld [vmem:[#allocation10 + $0x504] sm:$0xf]  ;;  %v3023_v49 = vor.u32 %v3786_v28, %v3020_v31  ;;  %v2755_v57 = vor.u32 %v3721_v47, %v2754_v46  ;;  %v3717_v1 = vld [vmem:[#allocation10 + $0x1d4] sm:$0xf0] }
  0x91   :  { %v3148_v38 = vld [vmem:[#allocation10 + $0x510] sm:$0xf0]  ;;  %v3850_v39 = vld [vmem:[#allocation10 + $0x604] sm:$0xf]  ;;  %v3423_v45 = vor.u32 %v3886_v32, %v3420_v33  ;;  %v3681_v11 = vld [vmem:[#allocation10 + $0xb4] sm:$0xf0] }
  0x92   :  { %v3276_v40 = vld [vmem:[#allocation10 + $0x610] sm:$0xf0]  ;;  %v3882_v51 = vld [vmem:[#allocation10 + $0x704] sm:$0xf]  ;;  %v3151_v54 = vor.u32 %v3818_v37, %v3148_v38  ;;  %v2850_v14 = vld [vmem:[#allocation10 + $0x2a8] sm:$0xf] }
  0x93   :  { %1934 = vmatpush.bf16.msra.mxu0 %v3471_v0  ;;  %1909 = vmatpush.bf16.msrb.mxu2 %v3199_v4  ;;  %v3404_v52 = vld [vmem:[#allocation10 + $0x710] sm:$0xf0]  ;;  %v3279_v55 = vor.u32 %v3850_v39, %v3276_v40  ;;  %v2738_v0 = vld [vmem:[#allocation10 + $0x1c8] sm:$0xf]  ;;  %v3011_v4 = vor.u32 %v3785_v60, %v3010_v59  ;;  %v3745_v15 = vld [vmem:[#allocation10 + $0x2b4] sm:$0xf0] }
  0x94   :  { %1922 = vmatpush.bf16.msrb.mxu3 %v3327_v5  ;;  %1897 = vmatpush.bf16.msrb.mxu1 %v3055_v13  ;;  %v3407_v62 = vor.u32 %v3882_v51, %v3404_v52  ;;  %v2611_v5 = vor.u32 %v3685_v63, %v2610_v58  ;;  %v2739_v6 = vor.u32 %v3717_v1, %v2738_v0  ;;  %v3713_v13 = vld [vmem:[#allocation10 + $0x1b4] sm:$0xf0]  ;;  %v2578_v21 = vld [vmem:[#allocation10 + $0x88] sm:$0xf] }
  0x95   :  { %v2978_v22 = vld [vmem:[#allocation10 + $0x3a8] sm:$0xf]  ;;  %v3777_v23 = vld [vmem:[#allocation10 + $0x3b4] sm:$0xf0]  ;;  %v2851_v25 = vor.u32 %v3745_v15, %v2850_v14 }
  0x96   :  { %v3677_v26 = vld [vmem:[#allocation10 + $0x94] sm:$0xf0]  ;;  %v2979_v32 = vor.u32 %v3777_v23, %v2978_v22  ;;  %v2962_v37 = vld [vmem:[#allocation10 + $0x388] sm:$0xf] }
  0x97   :  { %1935 = vmatpush.bf16.msra.mxu0 %v3455_v12  ;;  %1910 = vmatpush.bf16.msrb.mxu2 %v3183_v16  ;;  %v2722_v12 = vld [vmem:[#allocation10 + $0x1a8] sm:$0xf]  ;;  %v2995_v16 = vor.u32 %v3781_v9, %v2994_v8  ;;  %v3709_v28 = vld [vmem:[#allocation10 + $0x194] sm:$0xf0]  ;;  %v2579_v33 = vor.u32 %v3677_v26, %v2578_v21 }
  0x98   :  { %1923 = vmatpush.bf16.msrb.mxu3 %v3311_v17  ;;  %1898 = vmatpush.bf16.msrb.mxu1 %v3039_v29  ;;  %v2595_v17 = vor.u32 %v3681_v11, %v2594_v7  ;;  %v2723_v20 = vor.u32 %v3713_v13, %v2722_v12  ;;  %v2834_v29 = vld [vmem:[#allocation10 + $0x288] sm:$0xf]  ;;  %v3741_v31 = vld [vmem:[#allocation10 + $0x294] sm:$0xf0] }
  0x99   :  { %v3773_v38 = vld [vmem:[#allocation10 + $0x394] sm:$0xf0]  ;;  %v2835_v39 = vor.u32 %v3741_v31, %v2834_v29  ;;  %v2690_v42 = vld [vmem:[#allocation10 + $0x168] sm:$0xf] }
  0x9a   :  { %v3673_v40 = vld [vmem:[#allocation10 + $0x74] sm:$0xf0]  ;;  %v2963_v47 = vor.u32 %v3773_v38, %v2962_v37  ;;  %v2546_v50 = vld [vmem:[#allocation10 + $0x48] sm:$0xf] }
  0x9b   :  { %1936 = vmatpush.bf16.msra.mxu0 %v3439_v27  ;;  %1911 = vmatpush.bf16.msrb.mxu2 %v3167_v34  ;;  %v2706_v27 = vld [vmem:[#allocation10 + $0x188] sm:$0xf]  ;;  %v3705_v44 = vld [vmem:[#allocation10 + $0x174] sm:$0xf0] }
  0x9c   :  { %1924 = vmatpush.bf16.msrb.mxu3 %v3295_v35  ;;  %1899 = vmatpush.bf16.msrb.mxu1 %v3023_v49  ;;  %v2707_v34 = vor.u32 %v3709_v28, %v2706_v27  ;;  %v2562_v35 = vld [vmem:[#allocation10 + $0x68] sm:$0xf]  ;;  %v3737_v46 = vld [vmem:[#allocation10 + $0x274] sm:$0xf0]  ;;  %v2691_v49 = vor.u32 %v3705_v44, %v2690_v42 }
  0x9d   :  { %v2563_v48 = vor.u32 %v3673_v40, %v2562_v35  ;;  %v2946_v51 = vld [vmem:[#allocation10 + $0x368] sm:$0xf]  ;;  %v3769_v52 = vld [vmem:[#allocation10 + $0x374] sm:$0xf0]  ;;  %v3957_v40 = vld [vmem:[#allocation7] ss:$0 sm:$0xff] }
  0x9e   :  { %v2802_v58 = vld [vmem:[#allocation10 + $0x248] sm:$0xf]  ;;  %v3733_v59 = vld [vmem:[#allocation10 + $0x254] sm:$0xf0]  ;;  %v2947_v60 = vor.u32 %v3769_v52, %v2946_v51 }
  0x9f   :  { %1937 = vmatpush.bf16.msra.mxu0 %v3423_v45  ;;  %1912 = vmatpush.bf16.msrb.mxu2 %v3151_v54  ;;  %v2818_v45 = vld [vmem:[#allocation10 + $0x268] sm:$0xf]  ;;  %v3765_v1 = vld [vmem:[#allocation10 + $0x354] sm:$0xf0]  ;;  %v2803_v2 = vor.u32 %v3733_v59, %v2802_v58 }
  0xa0   :  { %1925 = vmatpush.bf16.msrb.mxu3 %v3279_v55  ;;  %1944 = vmatpush.bf16.msra.mxu1 %v2627_v56  ;;  %v2819_v54 = vor.u32 %v3737_v46, %v2818_v45  ;;  %v3669_v55 = vld [vmem:[#allocation10 + $0x54] sm:$0xf0]  ;;  %v2674_v56 = vld [vmem:[#allocation10 + $0x148] sm:$0xf] }
  0xa1   :  { %1900 = vmatmul.bf16.vlgmr.msrb.gmra.mxu1 %v4240_v36  ;;  %v2530_v63 = vld [vmem:[#allocation10 + $0x28] sm:$0xf]  ;;  %v3665_v3 = vld [vmem:[#allocation10 + $0x34] sm:$0xf0] }
  0xa2   :  { %1913 = vmatmul.bf16.vlgmr.msrb.gmra.mxu2 %v4242_v41  ;;  %v2930_v0 = vld [vmem:[#allocation10 + $0x348] sm:$0xf]  ;;  %v3729_v7 = vld [vmem:[#allocation10 + $0x234] sm:$0xf0]  ;;  %v2531_v11 = vor.u32 %v3665_v3, %v2530_v63 }
  0xa3   :  { %1957 = vmatpush.bf16.msra.mxu2 %v2755_v57  ;;  %1938 = vmatpush.bf16.msra.mxu0 %v3407_v62  ;;  %v3701_v57 = vld [vmem:[#allocation10 + $0x154] sm:$0xf0]  ;;  %v2931_v8 = vor.u32 %v3765_v1, %v2930_v0  ;;  %v2514_v9 = vld [vmem:[#allocation10 + $0x8] sm:$0xf] }
  0xa4   :  { %1970 = vmatpush.bf16.msra.mxu3 %v2883_v61  ;;  %1945 = vmatpush.bf16.msra.mxu1 %v2611_v5  ;;  %v2547_v61 = vor.u32 %v3669_v55, %v2546_v50  ;;  %v2675_v62 = vor.u32 %v3701_v57, %v2674_v56  ;;  %v3697_v5 = vld [vmem:[#allocation10 + $0x134] sm:$0xf0]  ;;  %v2642_v13 = vld [vmem:[#allocation10 + $0x108] sm:$0xf] }
  0xa5   :  { %1926 = vmatmul.bf16.vlgmr.msrb.gmra.mxu3 %v4244_v43  ;;  %v2914_v14 = vld [vmem:[#allocation10 + $0x328] sm:$0xf]  ;;  %v3761_v15 = vld [vmem:[#allocation10 + $0x334] sm:$0xf0] }
  0xa6   :  { %1939 = vmatmul.bf16.vlgmr.msra.gmra.mxu0 %v4247_v53  ;;  %v3725_v21 = vld [vmem:[#allocation10 + $0x214] sm:$0xf0]  ;;  %v3138_v22 = vld [vmem:[#allocation10 + $0x4e8] sm:$0xf]  ;;  %v2915_v26 = vor.u32 %v3761_v15, %v2914_v14 }
  0xa7   :  { %1983 = vmatpush.bf16.msrb.mxu0 %v3011_v4  ;;  %1958 = vmatpush.bf16.msra.mxu2 %v2739_v6  ;;  %v2658_v4 = vld [vmem:[#allocation10 + $0x128] sm:$0xf]  ;;  %v3817_v23 = vld [vmem:[#allocation10 + $0x4f4] sm:$0xf0] }
  0xa8   :  { %1971 = vmatpush.bf16.msra.mxu3 %v2867_v10  ;;  %1946 = vmatpush.bf16.msra.mxu1 %v2595_v17  ;;  %v2786_v6 = vld [vmem:[#allocation10 + $0x228] sm:$0xf]  ;;  %v3661_v10 = vld [vmem:[#allocation10 + $0x14] sm:$0xf0]  ;;  %v2659_v12 = vor.u32 %v3697_v5, %v2658_v4  ;;  %v3139_v37 = vor.u32 %v3817_v23, %v3138_v22 }
  0xa9   :  { %v3693_v17 = vld [vmem:[#allocation10 + $0x114] sm:$0xf0]  ;;  %v3394_v28 = vld [vmem:[#allocation10 + $0x6e8] sm:$0xf]  ;;  %v2515_v31 = vor.u32 %v3661_v10, %v2514_v9 }
  0xaa   :  { %v3849_v27 = vld [vmem:[#allocation10 + $0x5f4] sm:$0xf0]  ;;  %v3522_v38 = vld [vmem:[#allocation10 + $0x7e8] sm:$0xf] }
  0xab   :  { %1984 = vmatpush.bf16.msrb.mxu0 %v2995_v16  ;;  %1959 = vmatpush.bf16.msra.mxu2 %v2723_v20  ;;  %v2787_v16 = vor.u32 %v3729_v7, %v2786_v6  ;;  %v2770_v20 = vld [vmem:[#allocation10 + $0x208] sm:$0xf]  ;;  %v3881_v29 = vld [vmem:[#allocation10 + $0x6f4] sm:$0xf0] }
  0xac   :  { %1972 = vmatpush.bf16.msra.mxu3 %v2851_v25  ;;  %1947 = vmatpush.bf16.msra.mxu1 %v2579_v33  ;;  %v3266_v25 = vld [vmem:[#allocation10 + $0x5e8] sm:$0xf]  ;;  %v2771_v35 = vor.u32 %v3725_v21, %v2770_v20  ;;  %v3395_v44 = vor.u32 %v3881_v29, %v3394_v28  ;;  %v3813_v46 = vld [vmem:[#allocation10 + $0x4d4] sm:$0xf0] }
  0xad   :  { %v2898_v33 = vld [vmem:[#allocation10 + $0x308] sm:$0xf]  ;;  %v3267_v42 = vor.u32 %v3849_v27, %v3266_v25  ;;  %v3877_v51 = vld [vmem:[#allocation10 + $0x6d4] sm:$0xf0] }
  0xae   :  { %v3122_v45 = vld [vmem:[#allocation10 + $0x4c8] sm:$0xf]  ;;  %v3909_v57 = vld [vmem:[#allocation10 + $0x7d4] sm:$0xf0] }
  0xaf   :  { %1985 = vmatpush.bf16.msrb.mxu0 %v2979_v32  ;;  %1960 = vmatpush.bf16.msra.mxu2 %v2707_v34  ;;  %v2643_v32 = vor.u32 %v3693_v17, %v2642_v13  ;;  %v3757_v34 = vld [vmem:[#allocation10 + $0x314] sm:$0xf0]  ;;  %v3378_v50 = vld [vmem:[#allocation10 + $0x6c8] sm:$0xf]  ;;  %v3123_v55 = vor.u32 %v3813_v46, %v3122_v45 }
  0xb0   :  { %1973 = vmatpush.bf16.msra.mxu3 %v2835_v39  ;;  %1948 = vmatpush.bf16.msra.mxu1 %v2563_v48  ;;  %v3913_v39 = vld [vmem:[#allocation10 + $0x7f4] sm:$0xf0]  ;;  %v2899_v48 = vor.u32 %v3757_v34, %v2898_v33  ;;  %v3506_v56 = vld [vmem:[#allocation10 + $0x7c8] sm:$0xf] }
  0xb1   :  { %v3523_v52 = vor.u32 %v3913_v39, %v3522_v38  ;;  %v3234_v63 = vld [vmem:[#allocation10 + $0x5a8] sm:$0xf]  ;;  %v3841_v0 = vld [vmem:[#allocation10 + $0x5b4] sm:$0xf0]  ;;  %v3507_v3 = vor.u32 %v3909_v57, %v3506_v56 }
  0xb2   :  { %v3362_v1 = vld [vmem:[#allocation10 + $0x6a8] sm:$0xf]  ;;  %v3905_v6 = vld [vmem:[#allocation10 + $0x7b4] sm:$0xf0]  ;;  %v3235_v7 = vor.u32 %v3841_v0, %v3234_v63 }
  0xb3   :  { %1986 = vmatpush.bf16.msrb.mxu0 %v2963_v47  ;;  %1961 = vmatpush.bf16.msra.mxu2 %v2691_v49  ;;  %v3250_v47 = vld [vmem:[#allocation10 + $0x5c8] sm:$0xf]  ;;  %v3845_v49 = vld [vmem:[#allocation10 + $0x5d4] sm:$0xf0] }
  0xb4   :  { %1974 = vmatpush.bf16.msra.mxu3 %v2819_v54  ;;  %1949 = vmatpush.bf16.msra.mxu1 %v2547_v61  ;;  %v153_v54 = vpop.f32.mrf.mxu0  ;;  %v3251_v59 = vor.u32 %v3845_v49, %v3250_v47  ;;  %v3106_v61 = vld [vmem:[#allocation10 + $0x4a8] sm:$0xf]  ;;  %v3805_v10 = vld [vmem:[#allocation10 + $0x494] sm:$0xf0] }
  0xb5   :  { %v154_v58 = vadd.f32 %v3957_v40, %v153_v54  ;;  %v3490_v5 = vld [vmem:[#allocation10 + $0x7a8] sm:$0xf]  ;;  %v3869_v14 = vld [vmem:[#allocation10 + $0x694] sm:$0xf0] }
  0xb6   :  { %v3090_v9 = vld [vmem:[#allocation10 + $0x488] sm:$0xf]  ;;  %v3491_v15 = vor.u32 %v3905_v6, %v3490_v5  ;;  %v3901_v23 = vld [vmem:[#allocation10 + $0x794] sm:$0xf0] }
  0xb7   :  { %1987 = vmatpush.bf16.msrb.mxu0 %v2947_v60  ;;  %1962 = vmatpush.bf16.msra.mxu2 %v2675_v62  ;;  %v3379_v60 = vor.u32 %v3877_v51, %v3378_v50  ;;  %v3809_v62 = vld [vmem:[#allocation10 + $0x4b4] sm:$0xf0]  ;;  %3959 = vtanh.f32 %v154_v58  ;;  %v3346_v13 = vld [vmem:[#allocation10 + $0x688] sm:$0xf]  ;;  %v3091_v20 = vor.u32 %v3805_v10, %v3090_v9 }
  0xb8   :  { %1975 = vmatpush.bf16.msra.mxu3 %v2803_v2  ;;  %1950 = vmatpush.bf16.msra.mxu1 %v2531_v11  ;;  %v3873_v2 = vld [vmem:[#allocation10 + $0x6b4] sm:$0xf0]  ;;  %v3107_v4 = vor.u32 %v3809_v62, %v3106_v61  ;;  %v3218_v11 = vld [vmem:[#allocation10 + $0x588] sm:$0xf] }
  0xb9   :  { %v3074_v21 = vld [vmem:[#allocation10 + $0x468] sm:$0xf]  ;;  %v3801_v27 = vld [vmem:[#allocation10 + $0x474] sm:$0xf0] }
  0xba   :  { %v3474_v22 = vld [vmem:[#allocation10 + $0x788] sm:$0xf]  ;;  %v3833_v29 = vld [vmem:[#allocation10 + $0x574] sm:$0xf0]  ;;  %v3075_v34 = vor.u32 %v3801_v27, %v3074_v21  ;;  %v3751_v21 = vld [vmem:[#allocation10 + $0x2ec] sm:$0xf] }
  0xbb   :  { %1988 = vmatpush.bf16.msrb.mxu0 %v2931_v8  ;;  %1963 = vmatpush.bf16.msra.mxu2 %v2659_v12  ;;  %v3363_v8 = vor.u32 %v3873_v2, %v3362_v1  ;;  %v3837_v12 = vld [vmem:[#allocation10 + $0x594] sm:$0xf0]  ;;  %v3202_v28 = vld [vmem:[#allocation10 + $0x568] sm:$0xf]  ;;  %v3475_v33 = vor.u32 %v3901_v23, %v3474_v22 }
  0xbc   :  { %1976 = vmatpush.bf16.msra.mxu3 %v2787_v16  ;;  %1951 = vmatpush.bf16.msra.mxu1 %v2515_v31  ;;  %v155_v16 = vpop.f32.mrf.mxu0  ;;  %v3219_v25 = vor.u32 %v3837_v12, %v3218_v11  ;;  %v3330_v31 = vld [vmem:[#allocation10 + $0x668] sm:$0xf]  ;;  %v3897_v38 = vld [vmem:[#allocation10 + $0x774] sm:$0xf0]  ;;  %v3203_v39 = vor.u32 %v3833_v29, %v3202_v28 }
  0xbd   :  { %v3960_v17 = vpop.eup %3959  ;;  %v4267_v45 = vld [vmem:[%s4302_s5] sm:$0xf]  ;;  %v3829_v46 = vld [vmem:[#allocation10 + $0x554] sm:$0xf0] }
  0xbe   :  { %2473 = vst [vmem:[#allocation13] sm:$0xff] %v3960_v17  ;;  %v3314_v47 = vld [vmem:[#allocation10 + $0x648] sm:$0xf]  ;;  %v420_v54 = vperm.slane %v4267_v45, 0  ;;  %v3793_v58 = vld [vmem:[#allocation10 + $0x434] sm:$0xf0] }
  0xbf   :  { %1989 = vmatpush.bf16.msrb.mxu0 %v2915_v26  ;;  %1964 = vmatpush.bf16.msra.mxu2 %v2643_v32  ;;  %v3347_v26 = vor.u32 %v3869_v14, %v3346_v13  ;;  %v3865_v32 = vld [vmem:[#allocation10 + $0x674] sm:$0xf0]  ;;  %v3442_v51 = vld [vmem:[#allocation10 + $0x748] sm:$0xf]  ;;  %v3687_v14 = vld [vmem:[#allocation10 + $0xec] sm:$0xf] }
  0xc0   :  { %1977 = vmatpush.bf16.msra.mxu3 %v2771_v35  ;;  %1996 = vmatpush.bf16.msrb.mxu1 %v3139_v37  ;;  %v3058_v35 = vld [vmem:[#allocation10 + $0x448] sm:$0xf]  ;;  %v3331_v40 = vor.u32 %v3865_v32, %v3330_v31  ;;  %v3857_v62 = vld [vmem:[#allocation10 + $0x634] sm:$0xf0]  ;;  %v3719_v17 = vld [vmem:[#allocation10 + $0x1ec] sm:$0xf] }
  0xc1   :  { %1952 = vmatmul.bf16.vlgmr.msra.gmra.mxu1 %v4230_v19  ;;  %v3458_v37 = vld [vmem:[#allocation10 + $0x768] sm:$0xf]  ;;  %v3889_v6 = vld [vmem:[#allocation10 + $0x734] sm:$0xf0] }
  0xc2   :  { %1965 = vmatmul.bf16.vlgmr.msra.gmra.mxu2 %v4228_v18  ;;  %v3459_v49 = vor.u32 %v3897_v38, %v3458_v37  ;;  %v3042_v57 = vld [vmem:[#allocation10 + $0x428] sm:$0xf]  ;;  %v3821_v11 = vld [vmem:[#allocation10 + $0x514] sm:$0xf0]  ;;  %v3783_v37 = vld [vmem:[#allocation10 + $0x3ec] sm:$0xf] }
  0xc3   :  { %2009 = vmatpush.bf16.msrb.mxu2 %v3267_v42  ;;  %1990 = vmatpush.bf16.msrb.mxu0 %v2899_v48  ;;  %v3797_v42 = vld [vmem:[#allocation10 + $0x454] sm:$0xf0]  ;;  %v3298_v61 = vld [vmem:[#allocation10 + $0x628] sm:$0xf]  ;;  %v3012_v38 = vld [vmem:[#allocation10 + $0x3f8] sm:$0xf0] }
  0xc4   :  { %2022 = vmatpush.bf16.msrb.mxu3 %v3395_v44  ;;  %1997 = vmatpush.bf16.msrb.mxu1 %v3123_v55  ;;  %v3186_v44 = vld [vmem:[#allocation10 + $0x548] sm:$0xf]  ;;  %v3861_v48 = vld [vmem:[#allocation10 + $0x654] sm:$0xf0]  ;;  %v3059_v50 = vor.u32 %v3797_v42, %v3058_v35  ;;  %v1784_v0 = vpop.f32.mrf.mxu0  ;;  %v3299_v9 = vor.u32 %v3857_v62, %v3298_v61  ;;  %v3683_v35 = vld [vmem:[#allocation10 + $0xcc] sm:$0xf] }
  0xc5   :  { %1978 = vmatmul.bf16.vlgmr.msra.gmra.mxu3 %v4232_v24  ;;  %v3187_v55 = vor.u32 %v3829_v46, %v3186_v44  ;;  %v3315_v56 = vor.u32 %v3861_v48, %v3314_v47  ;;  %v3026_v2 = vld [vmem:[#allocation10 + $0x408] sm:$0xf]  ;;  %v3853_v13 = vld [vmem:[#allocation10 + $0x614] sm:$0xf0]  ;;  %v1771_v23 = vpop.f32.mrf.mxu3  ;;  %v2612_v47 = vld [vmem:[#allocation10 + $0xd8] sm:$0xf0] }
  0xc6   :  { %1991 = vmatmul.bf16.vlgmr.msrb.gmra.mxu0 %v4234_v30  ;;  %v3426_v5 = vld [vmem:[#allocation10 + $0x728] sm:$0xf]  ;;  %v3885_v28 = vld [vmem:[#allocation10 + $0x714] sm:$0xf0]  ;;  %v3715_v48 = vld [vmem:[#allocation10 + $0x1cc] sm:$0xf] }
  0xc7   :  { %2035 = vmatpush.bf16.msra.mxu0 %v3523_v52  ;;  %2010 = vmatpush.bf16.msrb.mxu2 %v3251_v59  ;;  %v3893_v52 = vld [vmem:[#allocation10 + $0x754] sm:$0xf0]  ;;  %v3170_v59 = vld [vmem:[#allocation10 + $0x528] sm:$0xf]  ;;  %v3427_v16 = vor.u32 %v3889_v6, %v3426_v5  ;;  %v2596_v61 = vld [vmem:[#allocation10 + $0xb8] sm:$0xf0] }
  0xc8   :  { %2023 = vmatpush.bf16.msrb.mxu3 %v3379_v60  ;;  %1998 = vmatpush.bf16.msrb.mxu1 %v3107_v4  ;;  %v3825_v60 = vld [vmem:[#allocation10 + $0x534] sm:$0xf0]  ;;  %v3443_v1 = vor.u32 %v3893_v52, %v3442_v51  ;;  %v3154_v10 = vld [vmem:[#allocation10 + $0x508] sm:$0xf]  ;;  %v2868_v51 = vld [vmem:[#allocation10 + $0x2d8] sm:$0xf0] }
  0xc9   :  { %v3789_v4 = vld [vmem:[#allocation10 + $0x414] sm:$0xf0]  ;;  %v3282_v12 = vld [vmem:[#allocation10 + $0x608] sm:$0xf]  ;;  %v3155_v31 = vor.u32 %v3821_v11, %v3154_v10  ;;  %v3711_v62 = vld [vmem:[#allocation10 + $0x1ac] sm:$0xf] }
  0xca   :  { %v3410_v27 = vld [vmem:[#allocation10 + $0x708] sm:$0xf]  ;;  %v3283_v32 = vor.u32 %v3853_v13, %v3282_v12  ;;  %v2580_v11 = vld [vmem:[#allocation10 + $0x98] sm:$0xf0]  ;;  %v3707_v12 = vld [vmem:[#allocation10 + $0x18c] sm:$0xf] }
  0xcb   :  { %2036 = vmatpush.bf16.msra.mxu0 %v3507_v3  ;;  %2011 = vmatpush.bf16.msrb.mxu2 %v3235_v7  ;;  %v1745_v63 = vpop.f32.mrf.mxu1  ;;  %v3043_v3 = vor.u32 %v3793_v58, %v3042_v57  ;;  %v3411_v46 = vor.u32 %v3885_v28, %v3410_v27  ;;  %v3679_v57 = vld [vmem:[#allocation10 + $0xac] sm:$0xf]  ;;  %v2708_v13 = vld [vmem:[#allocation10 + $0x198] sm:$0xf0] }
  0xcc   :  { %2024 = vmatpush.bf16.msrb.mxu3 %v3363_v8  ;;  %1999 = vmatpush.bf16.msrb.mxu1 %v3091_v20  ;;  %v1746_v7 = vadd.f32 %v1745_v63, %v420_v54  ;;  %v3171_v8 = vor.u32 %v3825_v60, %v3170_v59  ;;  %v2756_v20 = vld [vmem:[#allocation10 + $0x1f8] sm:$0xf0]  ;;  %v1786_v42 = vpop.f32.mrf.mxu0  ;;  %v3015_v54 = vor.u32 %v3783_v37, %v3012_v38  ;;  %v3779_v58 = vld [vmem:[#allocation10 + $0x3cc] sm:$0xf] }
  0xcd   :  { %v2996_v59 = vld [vmem:[#allocation10 + $0x3d8] sm:$0xf0]  ;;  %v2599_v5 = vor.u32 %v3679_v57, %v2596_v61  ;;  %v3703_v28 = vld [vmem:[#allocation10 + $0x16c] sm:$0xf] }
  0xce   :  { %v2724_v63 = vld [vmem:[#allocation10 + $0x1b8] sm:$0xf0]  ;;  %v3667_v38 = vld [vmem:[#allocation10 + $0x4c] sm:$0xf] }
  0xcf   :  { %2037 = vmatpush.bf16.msra.mxu0 %v3491_v15  ;;  %2012 = vmatpush.bf16.msrb.mxu2 %v3219_v25  ;;  %v2628_v15 = vld [vmem:[#allocation10 + $0xf8] sm:$0xf0]  ;;  %v3027_v25 = vor.u32 %v3789_v4, %v3026_v2  ;;  %v1773_v2 = vpop.f32.mrf.mxu3  ;;  %v2999_v4 = vor.u32 %v3779_v58, %v2996_v59  ;;  %v2727_v6 = vor.u32 %v3711_v62, %v2724_v63  ;;  %v3663_v57 = vld [vmem:[#allocation10 + $0x2c] sm:$0xf] }
  0xd0   :  { %2025 = vmatpush.bf16.msrb.mxu3 %v3347_v26  ;;  %2000 = vmatpush.bf16.msrb.mxu1 %v3075_v34  ;;  %v2884_v26 = vld [vmem:[#allocation10 + $0x2f8] sm:$0xf0]  ;;  %v2759_v34 = vor.u32 %v3719_v17, %v2756_v20  ;;  %v2711_v20 = vor.u32 %v3707_v12, %v2708_v13  ;;  %v3763_v59 = vld [vmem:[#allocation10 + $0x34c] sm:$0xf] }
  0xd1   :  { %v1758_v22 = vpop.f32.mrf.mxu2  ;;  %v2887_v44 = vor.u32 %v3751_v21, %v2884_v26  ;;  %v3671_v21 = vld [vmem:[#allocation10 + $0x6c] sm:$0xf]  ;;  %v2564_v27 = vld [vmem:[#allocation10 + $0x78] sm:$0xf0] }
  0xd2   :  { %v1759_v29 = vadd.f32 %v1758_v22, %v1746_v7  ;;  %v3675_v7 = vld [vmem:[#allocation10 + $0x8c] sm:$0xf]  ;;  %v2532_v63 = vld [vmem:[#allocation10 + $0x38] sm:$0xf0] }
  0xd3   :  { %2038 = vmatpush.bf16.msra.mxu0 %v3475_v33  ;;  %2013 = vmatpush.bf16.msrb.mxu2 %v3203_v39  ;;  %v2631_v33 = vor.u32 %v3687_v14, %v2628_v15  ;;  %v3739_v14 = vld [vmem:[#allocation10 + $0x28c] sm:$0xf]  ;;  %v2836_v15 = vld [vmem:[#allocation10 + $0x298] sm:$0xf0]  ;;  %v2583_v17 = vor.u32 %v3675_v7, %v2580_v11 }
  0xd4   :  { %2026 = vmatpush.bf16.msrb.mxu3 %v3331_v40  ;;  %2001 = vmatpush.bf16.msrb.mxu1 %v3059_v50  ;;  %v1772_v39 = vadd.f32 %v1771_v23, %v1759_v29  ;;  %v1747_v40 = vpop.f32.mrf.mxu1  ;;  %v3747_v50 = vld [vmem:[#allocation10 + $0x2cc] sm:$0xf]  ;;  %v2964_v23 = vld [vmem:[#allocation10 + $0x398] sm:$0xf0]  ;;  %v2839_v26 = vor.u32 %v3739_v14, %v2836_v15 }
  0xd5   :  { %v2871_v60 = vor.u32 %v3747_v50, %v2868_v51  ;;  %v3771_v22 = vld [vmem:[#allocation10 + $0x38c] sm:$0xf]  ;;  %v2692_v29 = vld [vmem:[#allocation10 + $0x178] sm:$0xf0] }
  0xd6   :  { %v1785_v52 = vadd.f32 %v1784_v0, %v1772_v39  ;;  %v3743_v0 = vld [vmem:[#allocation10 + $0x2ac] sm:$0xf]  ;;  %v2695_v37 = vor.u32 %v3703_v28, %v2692_v29  ;;  %v2948_v40 = vld [vmem:[#allocation10 + $0x378] sm:$0xf0] }
  0xd7   :  { %2039 = vmatpush.bf16.msra.mxu0 %v3459_v49  ;;  %2014 = vmatpush.bf16.msrb.mxu2 %v3187_v55  ;;  %v2740_v49 = vld [vmem:[#allocation10 + $0x1d8] sm:$0xf0]  ;;  %v2615_v55 = vor.u32 %v3683_v35, %v2612_v47  ;;  %v2567_v35 = vor.u32 %v3671_v21, %v2564_v27  ;;  %v3767_v39 = vld [vmem:[#allocation10 + $0x36c] sm:$0xf] }
  0xd8   :  { %2027 = vmatpush.bf16.msrb.mxu3 %v3315_v56  ;;  %2002 = vmatpush.bf16.msrb.mxu1 %v3043_v3  ;;  %v2743_v56 = vor.u32 %v3715_v48, %v2740_v49  ;;  %v2852_v3 = vld [vmem:[#allocation10 + $0x2b8] sm:$0xf0]  ;;  %v3699_v47 = vld [vmem:[#allocation10 + $0x14c] sm:$0xf]  ;;  %v2951_v51 = vor.u32 %v3767_v39, %v2948_v40 }
  0xd9   :  { %v2855_v10 = vor.u32 %v3743_v0, %v2852_v3  ;;  %v2676_v48 = vld [vmem:[#allocation10 + $0x158] sm:$0xf0]  ;;  %v3731_v49 = vld [vmem:[#allocation10 + $0x24c] sm:$0xf] }
  0xda   :  { %v2804_v50 = vld [vmem:[#allocation10 + $0x258] sm:$0xf0]  ;;  %v3727_v0 = vld [vmem:[#allocation10 + $0x22c] sm:$0xf] }
  0xdb   :  { %2040 = vmatpush.bf16.msra.mxu0 %v3443_v1  ;;  %2015 = vmatpush.bf16.msrb.mxu2 %v3171_v8  ;;  %v1760_v1 = vpop.f32.mrf.mxu2  ;;  %v3775_v8 = vld [vmem:[#allocation10 + $0x3ac] sm:$0xf]  ;;  %v2807_v62 = vor.u32 %v3731_v49, %v2804_v50  ;;  %v2660_v2 = vld [vmem:[#allocation10 + $0x138] sm:$0xf0] }
  0xdc   :  { %2028 = vmatpush.bf16.msrb.mxu3 %v3299_v9  ;;  %2003 = vmatpush.bf16.msrb.mxu1 %v3027_v25  ;;  %v2980_v9 = vld [vmem:[#allocation10 + $0x3b8] sm:$0xf0]  ;;  %v3695_v1 = vld [vmem:[#allocation10 + $0x12c] sm:$0xf] }
  0xdd   :  { %v2788_v3 = vld [vmem:[#allocation10 + $0x238] sm:$0xf0]  ;;  %v3691_v11 = vld [vmem:[#allocation10 + $0x10c] sm:$0xf] }
  0xde   :  { %v1797_v25 = vpop.f32.mrf.mxu1  ;;  %v2516_v7 = vld [vmem:[#allocation10 + $0x18] sm:$0xf0]  ;;  %v3759_v12 = vld [vmem:[#allocation10 + $0x32c] sm:$0xf]  ;;  %v2791_v15 = vor.u32 %v3727_v0, %v2788_v3 }
  0xdf   :  { %2041 = vmatpush.bf16.msra.mxu0 %v3427_v16  ;;  %2016 = vmatpush.bf16.msrb.mxu2 %v3155_v31  ;;  %v2983_v16 = vor.u32 %v3775_v8, %v2980_v9  ;;  %v1798_v31 = vadd.f32 %v1797_v25, %v1785_v52  ;;  %v2535_v8 = vor.u32 %v3663_v57, %v2532_v63  ;;  %v2916_v13 = vld [vmem:[#allocation10 + $0x338] sm:$0xf0]  ;;  %v3815_v21 = vld [vmem:[#allocation10 + $0x4ec] sm:$0xf] }
  0xe0   :  { %2029 = vmatpush.bf16.msrb.mxu3 %v3283_v32  ;;  %2048 = vmatpush.bf16.msra.mxu1 %v2631_v33  ;;  %v3735_v32 = vld [vmem:[#allocation10 + $0x26c] sm:$0xf]  ;;  %v2820_v33 = vld [vmem:[#allocation10 + $0x278] sm:$0xf0]  ;;  %v2663_v9 = vor.u32 %v3695_v1, %v2660_v2  ;;  %v2919_v25 = vor.u32 %v3759_v12, %v2916_v13 }
  0xe1   :  { %2004 = vmatmul.bf16.vlgmr.msrb.gmra.mxu1 %v4240_v36  ;;  %v3879_v27 = vld [vmem:[#allocation10 + $0x6ec] sm:$0xf]  ;;  %v3396_v28 = vld [vmem:[#allocation10 + $0x6f8] sm:$0xf0] }
  0xe2   :  { %2017 = vmatmul.bf16.vlgmr.msrb.gmra.mxu2 %v4242_v41  ;;  %v3911_v39 = vld [vmem:[#allocation10 + $0x7ec] sm:$0xf]  ;;  %v3524_v40 = vld [vmem:[#allocation10 + $0x7f8] sm:$0xf0] }
  0xe3   :  { %2061 = vmatpush.bf16.msra.mxu2 %v2759_v34  ;;  %2042 = vmatpush.bf16.msra.mxu0 %v3411_v46  ;;  %v2967_v34 = vor.u32 %v3771_v22, %v2964_v23  ;;  %v1836_v42 = vpop.f32.mrf.mxu0  ;;  %v2548_v46 = vld [vmem:[#allocation10 + $0x58] sm:$0xf0]  ;;  %v3847_v23 = vld [vmem:[#allocation10 + $0x5ec] sm:$0xf] }
  0xe4   :  { %2074 = vmatpush.bf16.msra.mxu3 %v2887_v44  ;;  %2049 = vmatpush.bf16.msra.mxu1 %v2615_v55  ;;  %v2823_v44 = vor.u32 %v3735_v32, %v2820_v33  ;;  %v2679_v55 = vor.u32 %v3699_v47, %v2676_v48  ;;  %v3140_v22 = vld [vmem:[#allocation10 + $0x4f8] sm:$0xf0]  ;;  %v3755_v33 = vld [vmem:[#allocation10 + $0x30c] sm:$0xf] }
  0xe5   :  { %2030 = vmatmul.bf16.vlgmr.msrb.gmra.mxu3 %v4244_v43  ;;  %v1810_v52 = vpop.f32.mrf.mxu2  ;;  %v3124_v47 = vld [vmem:[#allocation10 + $0x4d8] sm:$0xf0]  ;;  %v3843_v48 = vld [vmem:[#allocation10 + $0x5cc] sm:$0xf] }
  0xe6   :  { %2043 = vmatmul.bf16.vlgmr.msra.gmra.mxu0 %v4247_v53  ;;  %v1799_v61 = vpop.f32.mrf.mxu1  ;;  %v3252_v50 = vld [vmem:[#allocation10 + $0x5d8] sm:$0xf0]  ;;  %v3871_v1 = vld [vmem:[#allocation10 + $0x6ac] sm:$0xf] }
  0xe7   :  { %2087 = vmatpush.bf16.msrb.mxu0 %v3015_v54  ;;  %2062 = vmatpush.bf16.msra.mxu2 %v2743_v56  ;;  %v2551_v54 = vor.u32 %v3667_v38, %v2548_v46  ;;  %v1811_v56 = vadd.f32 %v1810_v52, %v1798_v31  ;;  %v3143_v38 = vor.u32 %v3815_v21, %v3140_v22  ;;  %v3811_v46 = vld [vmem:[#allocation10 + $0x4cc] sm:$0xf]  ;;  %v3380_v52 = vld [vmem:[#allocation10 + $0x6d8] sm:$0xf0] }
  0xe8   :  { %2075 = vmatpush.bf16.msra.mxu3 %v2871_v60  ;;  %2050 = vmatpush.bf16.msra.mxu1 %v2599_v5  ;;  %v1823_v58 = vpop.f32.mrf.mxu3  ;;  %v2932_v60 = vld [vmem:[#allocation10 + $0x358] sm:$0xf0]  ;;  %v3867_v12 = vld [vmem:[#allocation10 + $0x68c] sm:$0xf] }
  0xe9   :  { %v2935_v5 = vor.u32 %v3763_v59, %v2932_v60  ;;  %v3508_v57 = vld [vmem:[#allocation10 + $0x7d8] sm:$0xf0]  ;;  %v3807_v60 = vld [vmem:[#allocation10 + $0x4ac] sm:$0xf] }
  0xea   :  { %v3108_v61 = vld [vmem:[#allocation10 + $0x4b8] sm:$0xf0]  ;;  %v3799_v21 = vld [vmem:[#allocation10 + $0x46c] sm:$0xf] }
  0xeb   :  { %2088 = vmatpush.bf16.msrb.mxu0 %v2999_v4  ;;  %2063 = vmatpush.bf16.msra.mxu2 %v2727_v6  ;;  %v1824_v4 = vadd.f32 %v1823_v58, %v1811_v56  ;;  %v3659_v6 = vld [vmem:[#allocation10 + $0xc] sm:$0xf]  ;;  %v1838_v14 = vpop.f32.mrf.mxu0  ;;  %v3255_v58 = vor.u32 %v3843_v48, %v3252_v50  ;;  %v3236_v63 = vld [vmem:[#allocation10 + $0x5b8] sm:$0xf0]  ;;  %v3111_v3 = vor.u32 %v3807_v60, %v3108_v61 }
  0xec   :  { %2076 = vmatpush.bf16.msra.mxu3 %v2855_v10  ;;  %2051 = vmatpush.bf16.msra.mxu1 %v2583_v17  ;;  %v3723_v17 = vld [vmem:[#allocation10 + $0x20c] sm:$0xf]  ;;  %v2519_v31 = vor.u32 %v3659_v6, %v2516_v7  ;;  %v3364_v2 = vld [vmem:[#allocation10 + $0x6b8] sm:$0xf0] }
  0xed   :  { %v4274_v10 = vadd.f32 %v1836_v42, %v1824_v4  ;;  %v1812_v29 = vpop.f32.mrf.mxu2  ;;  %v3907_v56 = vld [vmem:[#allocation10 + $0x7cc] sm:$0xf]  ;;  %v3367_v7 = vor.u32 %v3871_v1, %v3364_v2  ;;  %v3348_v13 = vld [vmem:[#allocation10 + $0x698] sm:$0xf0] }
  0xee   :  { %v3511_v0 = vor.u32 %v3907_v56, %v3508_v57  ;;  %v3903_v4 = vld [vmem:[#allocation10 + $0x7ac] sm:$0xf]  ;;  %v3076_v22 = vld [vmem:[#allocation10 + $0x478] sm:$0xf0] }
  0xef   :  { %2089 = vmatpush.bf16.msrb.mxu0 %v2983_v16  ;;  %2064 = vmatpush.bf16.msra.mxu2 %v2711_v20  ;;  %v2644_v16 = vld [vmem:[#allocation10 + $0x118] sm:$0xf0]  ;;  %v3891_v48 = vld [vmem:[#allocation10 + $0x74c] sm:$0xf]  ;;  %3961 = vtanh.f32 %v4274_v10 }
  0xf0   :  { %2077 = vmatpush.bf16.msra.mxu3 %v2839_v26  ;;  %2052 = vmatpush.bf16.msra.mxu1 %v2567_v35  ;;  %v2772_v20 = vld [vmem:[#allocation10 + $0x218] sm:$0xf0]  ;;  %v2647_v32 = vor.u32 %v3691_v11, %v2644_v16  ;;  %v1825_v35 = vpop.f32.mrf.mxu3  ;;  %v3835_v11 = vld [vmem:[#allocation10 + $0x58c] sm:$0xf] }
  0xf1   :  { %v3268_v26 = vld [vmem:[#allocation10 + $0x5f8] sm:$0xf0]  ;;  %v3827_v35 = vld [vmem:[#allocation10 + $0x54c] sm:$0xf] }
  0xf2   :  { %v3271_v42 = vor.u32 %v3847_v23, %v3268_v26  ;;  %v3476_v16 = vld [vmem:[#allocation10 + $0x798] sm:$0xf0]  ;;  %v3831_v23 = vld [vmem:[#allocation10 + $0x56c] sm:$0xf] }
  0xf3   :  { %2090 = vmatpush.bf16.msrb.mxu0 %v2967_v34  ;;  %2065 = vmatpush.bf16.msra.mxu2 %v2695_v37  ;;  %v2900_v34 = vld [vmem:[#allocation10 + $0x318] sm:$0xf0]  ;;  %v2775_v37 = vor.u32 %v3723_v17, %v2772_v20  ;;  %v3351_v20 = vor.u32 %v3867_v12, %v3348_v13  ;;  %v3823_v56 = vld [vmem:[#allocation10 + $0x52c] sm:$0xf] }
  0xf4   :  { %2078 = vmatpush.bf16.msra.mxu3 %v2823_v44  ;;  %2053 = vmatpush.bf16.msra.mxu1 %v2551_v54  ;;  %v3399_v44 = vor.u32 %v3879_v27, %v3396_v28  ;;  %v2903_v49 = vor.u32 %v3755_v33, %v2900_v34  ;;  %v3527_v54 = vor.u32 %v3911_v39, %v3524_v40  ;;  %v3332_v26 = vld [vmem:[#allocation10 + $0x678] sm:$0xf0]  ;;  %v3895_v28 = vld [vmem:[#allocation10 + $0x76c] sm:$0xf] }
  0xf5   :  { %v3460_v29 = vld [vmem:[#allocation10 + $0x778] sm:$0xf0]  ;;  %v3795_v33 = vld [vmem:[#allocation10 + $0x44c] sm:$0xf] }
  0xf6   :  { %v3060_v34 = vld [vmem:[#allocation10 + $0x458] sm:$0xf0]  ;;  %v3859_v40 = vld [vmem:[#allocation10 + $0x64c] sm:$0xf] }
  0xf7   :  { %2091 = vmatpush.bf16.msrb.mxu0 %v2951_v51  ;;  %2066 = vmatpush.bf16.msra.mxu2 %v2679_v55  ;;  %v3875_v51 = vld [vmem:[#allocation10 + $0x6cc] sm:$0xf]  ;;  %v3127_v55 = vor.u32 %v3811_v46, %v3124_v47  ;;  %v3188_v39 = vld [vmem:[#allocation10 + $0x558] sm:$0xf0]  ;;  %v3063_v47 = vor.u32 %v3795_v33, %v3060_v34 }
  0xf8   :  { %2079 = vmatpush.bf16.msra.mxu3 %v2807_v62  ;;  %2054 = vmatpush.bf16.msra.mxu1 %v2535_v8  ;;  %v3383_v59 = vor.u32 %v3875_v51, %v3380_v52  ;;  %v3839_v62 = vld [vmem:[#allocation10 + $0x5ac] sm:$0xf]  ;;  %v3191_v51 = vor.u32 %v3827_v35, %v3188_v39  ;;  %v3172_v57 = vld [vmem:[#allocation10 + $0x538] sm:$0xf0] }
  0xf9   :  { %v3239_v6 = vor.u32 %v3839_v62, %v3236_v63  ;;  %v3803_v8 = vld [vmem:[#allocation10 + $0x48c] sm:$0xf]  ;;  %v421_v62 = vperm.slane %v4267_v45, 1  ;;  %v3428_v1 = vld [vmem:[#allocation10 + $0x738] sm:$0xf0]  ;;  %v3175_v2 = vor.u32 %v3823_v56, %v3172_v57  ;;  %v3914_v56 = vld [vmem:[#allocation11] sm:$0xff] }
  0xfa   :  { %v3887_v63 = vld [vmem:[#allocation10 + $0x72c] sm:$0xf]  ;;  %v3925_v34 = vld [vmem:[#allocation11 + $0x58] sm:$0xff]  ;;  %v3922_v57 = vld [vmem:[#allocation11 + $0x40] sm:$0xff] }
  0xfb   :  { %2092 = vmatpush.bf16.msrb.mxu0 %v2935_v5  ;;  %2067 = vmatpush.bf16.msra.mxu2 %v2663_v9  ;;  %v3492_v5 = vld [vmem:[#allocation10 + $0x7b8] sm:$0xf0] }
  0xfc   :  { %2080 = vmatpush.bf16.msra.mxu3 %v2791_v15  ;;  %2055 = vmatpush.bf16.msra.mxu1 %v2519_v31  ;;  %v3092_v9 = vld [vmem:[#allocation10 + $0x498] sm:$0xf0]  ;;  %v3899_v15 = vld [vmem:[#allocation10 + $0x78c] sm:$0xf] }
  0xfd   :  { %v3095_v14 = vor.u32 %v3803_v8, %v3092_v9  ;;  %v3479_v27 = vor.u32 %v3899_v15, %v3476_v16  ;;  %v3156_v8 = vld [vmem:[#allocation10 + $0x518] sm:$0xf0]  ;;  %v3851_v9 = vld [vmem:[#allocation10 + $0x60c] sm:$0xf] }
  0xfe   :  { %v3937_v35 = vld [vmem:[#allocation11 + $0xb8] sm:$0xff] }
  0xff   :  { %2093 = vmatpush.bf16.msrb.mxu0 %v2919_v25  ;;  %2068 = vmatpush.bf16.msra.mxu2 %v2647_v32  ;;  %v3204_v25 = vld [vmem:[#allocation10 + $0x578] sm:$0xf0] }
 0x100   :  { %2081 = vmatpush.bf16.msra.mxu3 %v2775_v37  ;;  %2100 = vmatpush.bf16.msrb.mxu1 %v3143_v38  ;;  %v3207_v31 = vor.u32 %v3831_v23, %v3204_v25  ;;  %v1849_v37 = vpop.f32.mrf.mxu1 }
 0x101   :  { %2056 = vmatmul.bf16.vlgmr.msra.gmra.mxu1 %v4230_v19  ;;  %v3863_v19 = vld [vmem:[#allocation10 + $0x66c] sm:$0xf] }
 0x102   :  { %2069 = vmatmul.bf16.vlgmr.msra.gmra.mxu2 %v4228_v18  ;;  %v3220_v18 = vld [vmem:[#allocation10 + $0x598] sm:$0xf0]  ;;  %v3335_v32 = vor.u32 %v3863_v19, %v3332_v26  ;;  %v3920_v19 = vld [vmem:[#allocation11 + $0x30] sm:$0xff] }
 0x103   :  { %2113 = vmatpush.bf16.msrb.mxu2 %v3271_v42  ;;  %2094 = vmatpush.bf16.msrb.mxu0 %v2903_v49  ;;  %v3223_v17 = vor.u32 %v3835_v11, %v3220_v18  ;;  %v4280_v38 = vpop.f32.mrf.mxu0  ;;  %v3316_v42 = vld [vmem:[#allocation10 + $0x658] sm:$0xf0]  ;;  %v3431_v18 = vor.u32 %v3887_v63, %v3428_v1  ;;  %v3928_v26 = vld [vmem:[#allocation11 + $0x70] sm:$0xff] }
 0x104   :  { %2126 = vmatpush.bf16.msrb.mxu3 %v3399_v44  ;;  %2101 = vmatpush.bf16.msrb.mxu1 %v3127_v55  ;;  %v3463_v44 = vor.u32 %v3895_v28, %v3460_v29  ;;  %v3444_v49 = vld [vmem:[#allocation10 + $0x758] sm:$0xf0]  ;;  %v3319_v52 = vor.u32 %v3859_v40, %v3316_v42  ;;  %v3927_v28 = vld [vmem:[#allocation11 + $0x68] sm:$0xff]  ;;  %v3936_v42 = vld [vmem:[#allocation11 + $0xb0] sm:$0xff] }
 0x105   :  { %2082 = vmatmul.bf16.vlgmr.msra.gmra.mxu3 %v4232_v24  ;;  %v3495_v24 = vor.u32 %v3903_v4, %v3492_v5  ;;  %v1862_v46 = vpop.f32.mrf.mxu2  ;;  %v3044_v55 = vld [vmem:[#allocation10 + $0x438] sm:$0xf0]  ;;  %v3447_v60 = vor.u32 %v3891_v48, %v3444_v49  ;;  %v3819_v5 = vld [vmem:[#allocation10 + $0x50c] sm:$0xf] }
 0x106   :  { %2095 = vmatmul.bf16.vlgmr.msrb.gmra.mxu0 %v4234_v30  ;;  %v3079_v30 = vor.u32 %v3799_v21, %v3076_v22  ;;  %v3028_v4 = vld [vmem:[#allocation10 + $0x418] sm:$0xf0]  ;;  %v3159_v16 = vor.u32 %v3819_v5, %v3156_v8  ;;  %v3915_v48 = vld [vmem:[#allocation11 + $0x8] sm:$0xff] }
 0x107   :  { %2139 = vmatpush.bf16.msra.mxu0 %v3527_v54  ;;  %2114 = vmatpush.bf16.msrb.mxu2 %v3255_v58  ;;  %v3791_v54 = vld [vmem:[#allocation10 + $0x42c] sm:$0xf]  ;;  %v3284_v11 = vld [vmem:[#allocation10 + $0x618] sm:$0xf0] }
 0x108   :  { %2127 = vmatpush.bf16.msrb.mxu3 %v3383_v59  ;;  %2102 = vmatpush.bf16.msrb.mxu1 %v3111_v3  ;;  %v1875_v50 = vpop.f32.mrf.mxu3  ;;  %v3855_v58 = vld [vmem:[#allocation10 + $0x62c] sm:$0xf]  ;;  %v3300_v59 = vld [vmem:[#allocation10 + $0x638] sm:$0xf0]  ;;  %v3047_v61 = vor.u32 %v3791_v54, %v3044_v55  ;;  %v3934_v55 = vld [vmem:[#allocation11 + $0xa0] sm:$0xff] }
 0x109   :  { %v3787_v3 = vld [vmem:[#allocation10 + $0x40c] sm:$0xf]  ;;  %v3921_v21 = vld [vmem:[#allocation11 + $0x38] sm:$0xff] }
 0x10a   :  { %v3031_v13 = vor.u32 %v3787_v3, %v3028_v4  ;;  %v3929_v22 = vld [vmem:[#allocation11 + $0x78] sm:$0xff]  ;;  %v3923_v49 = vld [vmem:[#allocation11 + $0x48] sm:$0xff] }
 0x10b   :  { %2140 = vmatpush.bf16.msra.mxu0 %v3511_v0  ;;  %2115 = vmatpush.bf16.msrb.mxu2 %v3239_v6  ;;  %v3303_v0 = vor.u32 %v3855_v58, %v3300_v59  ;;  %v1851_v6 = vpop.f32.mrf.mxu1  ;;  %v3962_v58 = vpop.eup %3961  ;;  %v3933_v63 = vld [vmem:[#allocation11 + $0x98] sm:$0xff]  ;;  %v3931_v5 = vld [vmem:[#allocation11 + $0x88] sm:$0xff] }
 0x10c   :  { %2128 = vmatpush.bf16.msrb.mxu3 %v3367_v7  ;;  %2103 = vmatpush.bf16.msrb.mxu1 %v3095_v14  ;;  %v1890_v7 = vpop.f32.mrf.mxu0  ;;  %v3412_v14 = vld [vmem:[#allocation10 + $0x718] sm:$0xf0]  ;;  %v2156_v10 = vpack.c.bf16 %v3962_v58, %v3962_v58  ;;  %v422_v6 = vperm.slane %v4267_v45, 2 }
 0x10d   :  { %v1864_v12 = vpop.f32.mrf.mxu2 }
 0x10f   :  { %2141 = vmatpush.bf16.msra.mxu0 %v3495_v24  ;;  %2116 = vmatpush.bf16.msrb.mxu2 %v3223_v17  ;;  %v3883_v24 = vld [vmem:[#allocation10 + $0x70c] sm:$0xf]  ;;  %v3287_v17 = vor.u32 %v3851_v9, %v3284_v11  ;;  %v3930_v9 = vld [vmem:[#allocation11 + $0x80] sm:$0xff] }
 0x110   :  { %2129 = vmatpush.bf16.msrb.mxu3 %v3351_v20  ;;  %2104 = vmatpush.bf16.msrb.mxu1 %v3079_v30  ;;  %v1877_v15 = vpop.f32.mrf.mxu3  ;;  %v1850_v20 = vadd.f32 %v1849_v37, %v421_v62  ;;  %v3415_v23 = vor.u32 %v3883_v24, %v3412_v14  ;;  %v3919_v30 = vld [vmem:[#allocation11 + $0x28] sm:$0xff] }
 0x112   :  { %v1863_v25 = vadd.f32 %v1862_v46, %v1850_v20 }
 0x113   :  { %2142 = vmatpush.bf16.msra.mxu0 %v3479_v27  ;;  %2117 = vmatpush.bf16.msrb.mxu2 %v3207_v31  ;;  %v3918_v31 = vld [vmem:[#allocation11 + $0x20] sm:$0xff] }
 0x114   :  { %2130 = vmatpush.bf16.msrb.mxu3 %v3335_v32  ;;  %2105 = vmatpush.bf16.msrb.mxu1 %v3063_v47  ;;  %v1876_v27 = vadd.f32 %v1875_v50, %v1863_v25  ;;  %v3926_v32 = vld [vmem:[#allocation11 + $0x60] sm:$0xff] }
 0x116   :  { %v1889_v29 = vadd.f32 %v4280_v38, %v1876_v27  ;;  %v3924_v38 = vld [vmem:[#allocation11 + $0x50] sm:$0xff] }
 0x117   :  { %2143 = vmatpush.bf16.msra.mxu0 %v3463_v44  ;;  %2118 = vmatpush.bf16.msrb.mxu2 %v3191_v51  ;;  %v3935_v51 = vld [vmem:[#allocation11 + $0xa8] sm:$0xff] }
 0x118   :  { %2131 = vmatpush.bf16.msrb.mxu3 %v3319_v52  ;;  %2106 = vmatpush.bf16.msrb.mxu1 %v3047_v61 }
 0x11b   :  { %2144 = vmatpush.bf16.msra.mxu0 %v3447_v60  ;;  %2119 = vmatpush.bf16.msrb.mxu2 %v3175_v2 }
 0x11c   :  { %2132 = vmatpush.bf16.msrb.mxu3 %v3303_v0  ;;  %2107 = vmatpush.bf16.msrb.mxu1 %v3031_v13  ;;  %v3932_v0 = vld [vmem:[#allocation11 + $0x90] sm:$0xff] }
 0x11e   :  { %v1901_v33 = vpop.f32.mrf.mxu1 }
 0x11f   :  { %2145 = vmatpush.bf16.msra.mxu0 %v3431_v18  ;;  %2120 = vmatpush.bf16.msrb.mxu2 %v3159_v16 }
 0x120   :  { %2133 = vmatpush.bf16.msrb.mxu3 %v3287_v17  ;;  %2420 = vmatpush.bf16.msra.mxu1 %v3921_v21 }
 0x121   :  { %2108 = vmatmul.bf16.vlgmr.msrb.gmra.mxu1 %v4240_v36  ;;  %v1902_v36 = vadd.f32 %v1901_v33, %v1889_v29  ;;  %v3941_v33 = vld [vmem:[#allocation11 + $0xd8] sm:$0xff] }
 0x122   :  { %2121 = vmatmul.bf16.vlgmr.msrb.gmra.mxu2 %v4242_v41  ;;  %v3917_v41 = vld [vmem:[#allocation11 + $0x18] sm:$0xff] }
 0x123   :  { %2433 = vmatpush.bf16.msra.mxu2 %v3929_v22  ;;  %2146 = vmatpush.bf16.msra.mxu0 %v3415_v23 }
 0x124   :  { %2134 = vmatmul.bf16.vlgmr.msrb.gmra.mxu3 %v4244_v43  ;;  %2421 = vmatpush.bf16.msra.mxu1 %v3920_v19  ;;  %v1940_v43 = vpop.f32.mrf.mxu0  ;;  %v3945_v19 = vld [vmem:[#allocation11 + $0xf8] sm:$0xff] }
 0x125   :  { %v1914_v37 = vpop.f32.mrf.mxu2  ;;  %2446 = vmatpush.bf16.msra.mxu3 %v3937_v35  ;;  %v3940_v35 = vld [vmem:[#allocation11 + $0xd0] sm:$0xff] }
 0x126   :  { %2147 = vmatmul.bf16.vlgmr.msra.gmra.mxu0 %v4247_v53  ;;  %v1915_v40 = vadd.f32 %v1914_v37, %v1902_v36  ;;  %v3916_v53 = vld [vmem:[#allocation11 + $0x10] sm:$0xff]  ;;  %v1903_v46 = vpop.f32.mrf.mxu1  ;;  %v3939_v37 = vld [vmem:[#allocation11 + $0xc8] sm:$0xff] }
 0x127   :  { %2434 = vmatpush.bf16.msra.mxu2 %v3928_v26  ;;  %2459 = vmatpush.bf16.msrb.mxu0 %v3945_v19  ;;  %v3944_v26 = vld [vmem:[#allocation11 + $0xf0] sm:$0xff] }
 0x128   :  { %2422 = vmatpush.bf16.msra.mxu1 %v3919_v30  ;;  %v1927_v39 = vpop.f32.mrf.mxu3 }
 0x129   :  { %v1928_v44 = vadd.f32 %v1927_v39, %v1915_v40  ;;  %2447 = vmatpush.bf16.msra.mxu3 %v3936_v42  ;;  %v3938_v42 = vld [vmem:[#allocation11 + $0xc0] sm:$0xff] }
 0x12b   :  { %2435 = vmatpush.bf16.msra.mxu2 %v3927_v28  ;;  %v1941_v47 = vadd.f32 %v1940_v43, %v1928_v44  ;;  %2460 = vmatpush.bf16.msrb.mxu0 %v3944_v26  ;;  %v3943_v28 = vld [vmem:[#allocation11 + $0xe8] sm:$0xff]  ;;  %v423_v44 = vperm.slane %v4267_v45, 3 }
 0x12c   :  { %2423 = vmatpush.bf16.msra.mxu1 %v3918_v31  ;;  %v1942_v50 = vpop.f32.mrf.mxu0 }
 0x12d   :  { %3963 = vtanh.f32 %v1941_v47  ;;  %v1916_v52 = vpop.f32.mrf.mxu2  ;;  %2448 = vmatpush.bf16.msra.mxu3 %v3935_v51 }
 0x12f   :  { %2436 = vmatpush.bf16.msra.mxu2 %v3926_v32  ;;  %2461 = vmatpush.bf16.msrb.mxu0 %v3943_v28  ;;  %v3942_v32 = vld [vmem:[#allocation11 + $0xe0] sm:$0xff] }
 0x130   :  { %2424 = vmatpush.bf16.msra.mxu1 %v3917_v41  ;;  %v1929_v54 = vpop.f32.mrf.mxu3 }
 0x131   :  { %2449 = vmatpush.bf16.msra.mxu3 %v3934_v55 }
 0x133   :  { %2437 = vmatpush.bf16.msra.mxu2 %v3925_v34  ;;  %v3964_v59 = vpop.eup %3963  ;;  %2462 = vmatpush.bf16.msrb.mxu0 %v3942_v32 }
 0x134   :  { %2425 = vmatpush.bf16.msra.mxu1 %v3916_v53  ;;  %v2157_v60 = vpack.c.bf16 %v3964_v59, %v3964_v59 }
 0x135   :  { %2450 = vmatpush.bf16.msra.mxu3 %v3933_v63 }
 0x137   :  { %2438 = vmatpush.bf16.msra.mxu2 %v3924_v38  ;;  %2463 = vmatpush.bf16.msrb.mxu0 %v3941_v33 }
 0x138   :  { %2426 = vmatpush.bf16.msra.mxu1 %v3915_v48 }
 0x139   :  { %2451 = vmatpush.bf16.msra.mxu3 %v3932_v0 }
 0x13b   :  { %2439 = vmatpush.bf16.msra.mxu2 %v3923_v49  ;;  %2464 = vmatpush.bf16.msrb.mxu0 %v3940_v35 }
 0x13c   :  { %2427 = vmatpush.bf16.msra.mxu1 %v3914_v56 }
 0x13d   :  { %2452 = vmatpush.bf16.msra.mxu3 %v3931_v5 }
 0x13e   :  { %v1953_v61 = vpop.f32.mrf.mxu1 }
 0x13f   :  { %2440 = vmatpush.bf16.msra.mxu2 %v3922_v57  ;;  %2428 = vmatmul.bf16.vlgmr.msra.gmra.mxu1 %v2156_v10  ;;  %v1954_v11 = vadd.f32 %v1953_v61, %v422_v6 }
 0x140   :  { %2465 = vmatpush.bf16.msrb.mxu0 %v3939_v37 }
 0x141   :  { %2453 = vmatpush.bf16.msra.mxu3 %v3930_v9 }
 0x142   :  { %2441 = vmatmul.bf16.vlgmr.msra.gmra.mxu2 %v2157_v60 }
 0x143   :  { %v1992_v62 = vpop.f32.mrf.mxu0 }
 0x144   :  { %2466 = vmatpush.bf16.msrb.mxu0 %v3938_v42 }
 0x145   :  { %v1966_v1 = vpop.f32.mrf.mxu2 }
 0x146   :  { %v1955_v3 = vpop.f32.mrf.mxu1  ;;  %v1967_v18 = vadd.f32 %v1966_v1, %v1954_v11  ;;  %v3958_v1 = vld [vmem:[%s4304_s7] ss:$0 sm:$0xff] }
 0x148   :  { %v1979_v2 = vpop.f32.mrf.mxu3 }
 0x149   :  { %v1980_v12 = vadd.f32 %v1979_v2, %v1967_v18 }
 0x14b   :  { %v1994_v4 = vpop.f32.mrf.mxu0  ;;  %v1993_v13 = vadd.f32 %v1992_v62, %v1980_v12 }
 0x14d   :  { %v1968_v7 = vpop.f32.mrf.mxu2 }
 0x150   :  { %v1981_v8 = vpop.f32.mrf.mxu3 }
 0x15e   :  { %v2005_v24 = vpop.f32.mrf.mxu1 }
 0x15f   :  { %v2006_v14 = vadd.f32 %v2005_v24, %v1993_v13 }
 0x163   :  { %v2044_v15 = vpop.f32.mrf.mxu0 }
 0x165   :  { %v2018_v16 = vpop.f32.mrf.mxu2 }
 0x166   :  { %v2019_v20 = vadd.f32 %v2018_v16, %v2006_v14  ;;  %v2007_v22 = vpop.f32.mrf.mxu1 }
 0x168   :  { %v2031_v17 = vpop.f32.mrf.mxu3 }
 0x169   :  { %v2032_v21 = vadd.f32 %v2031_v17, %v2019_v20 }
 0x16b   :  { %v2045_v23 = vadd.f32 %v2044_v15, %v2032_v21  ;;  %v2046_v25 = vpop.f32.mrf.mxu0 }
 0x16d   :  { %3965 = vtanh.f32 %v2045_v23  ;;  %v2020_v27 = vpop.f32.mrf.mxu2 }
 0x170   :  { %v2033_v30 = vpop.f32.mrf.mxu3 }
 0x173   :  { %v3966_v29 = vpop.eup %3965 }
 0x174   :  { %v2158_v31 = vpack.c.bf16 %v3966_v29, %v3966_v29 }
 0x176   :  { %2454 = vmatmul.bf16.vlgmr.msra.gmra.mxu3 %v2158_v31 }
 0x17e   :  { %v2057_v36 = vpop.f32.mrf.mxu1 }
 0x17f   :  { %v2058_v46 = vadd.f32 %v2057_v36, %v423_v44 }
 0x183   :  { %v2096_v41 = vpop.f32.mrf.mxu0 }
 0x185   :  { %v2070_v34 = vpop.f32.mrf.mxu2 }
 0x186   :  { %v2059_v39 = vpop.f32.mrf.mxu1  ;;  %v2071_v47 = vadd.f32 %v2070_v34, %v2058_v46 }
 0x188   :  { %v2083_v43 = vpop.f32.mrf.mxu3 }
 0x189   :  { %v2084_v48 = vadd.f32 %v2083_v43, %v2071_v47 }
 0x18b   :  { %v2098_v40 = vpop.f32.mrf.mxu0  ;;  %v2097_v50 = vadd.f32 %v2096_v41, %v2084_v48 }
 0x18d   :  { %v2072_v53 = vpop.f32.mrf.mxu2 }
 0x190   :  { %v2085_v38 = vpop.f32.mrf.mxu3 }
 0x19e   :  { %v2109_v49 = vpop.f32.mrf.mxu1 }
 0x19f   :  { %v2110_v52 = vadd.f32 %v2109_v49, %v2097_v50 }
 0x1a3   :  { %v2148_v51 = vpop.f32.mrf.mxu0 }
 0x1a5   :  { %v2122_v54 = vpop.f32.mrf.mxu2 }
 0x1a6   :  { %v2123_v56 = vadd.f32 %v2122_v54, %v2110_v52  ;;  %v2111_v57 = vpop.f32.mrf.mxu1 }
 0x1a7   :  { %v2135_v55 = vpop.f32.mrf.mxu3 }
 0x1a8   :  { %v2136_v58 = vadd.f32 %v2135_v55, %v2123_v56 }
 0x1aa   :  { %v2149_v59 = vadd.f32 %v2148_v51, %v2136_v58 }
 0x1ab   :  { %v2150_v10 = vpop.f32.mrf.mxu0 }
 0x1ac   :  { %3967 = vtanh.f32 %v2149_v59 }
 0x1ad   :  { %v2124_v60 = vpop.f32.mrf.mxu2 }
 0x1af   :  { %v2137_v61 = vpop.f32.mrf.mxu3 }
 0x1b2   :  { %v3968_v62 = vpop.eup %3967 }
 0x1b3   :  { %v2159_v45 = vpack.c.bf16 %v3968_v62, %v3968_v62 }
 0x1b5   :  { %2467 = vmatmul.bf16.vlgmr.msrb.gmra.mxu0 %v2159_v45 }
 0x1bc   :  { %v2429_v63 = vpop.f32.mrf.mxu1 }
 0x1bd   :  { %v2430_v2 = vadd.f32 %v3958_v1, %v2429_v63 }
 0x1c4   :  { %v2431_v4 = vpop.f32.mrf.mxu1 }
 0x1c5   :  { %v2442_v0 = vpop.f32.mrf.mxu2 }
 0x1c6   :  { %v2443_v3 = vadd.f32 %v2442_v0, %v2430_v2 }
 0x1cd   :  { %v2444_v5 = vpop.f32.mrf.mxu2 }
 0x1f9   :  { %v2455_v6 = vpop.f32.mrf.mxu3 }
 0x1fa   :  { %v2456_v8 = vadd.f32 %v2455_v6, %v2443_v3 }
 0x201   :  { %v2457_v7 = vpop.f32.mrf.mxu3 }
 0x232   :  { %v2468_v9 = vpop.f32.mrf.mxu0 }
 0x233   :  { %v2469_v11 = vadd.f32 %v2468_v9, %v2456_v8 }
 0x235   :  { %v2472_v18 = vmax.f32 %v2469_v11, 0.0 }
 0x237   :  { %2474 = vst [vmem:[#allocation13 + $0x8] sm:$0xff] %v2472_v18 }
 0x238   :  { %2485 = dma.vmem_to_hbm [thread:$0]  %s2481_s15, 256, %s2483_s1, [#allocation4]  }
 0x23a   :  { %v2470_v12 = vpop.f32.mrf.mxu0 }
 0x23b   :  { %4145 = dma.done.wait [#allocation4], 256  }
 0x23c   :  { %4146 = vsyncadd [#allocation4], 4294967040 }
 0x23d   :  { %2490 = vsyncpa [#allocation3], 1 }
 0x23e   :  { %2491 = vsyncpa [#allocation6], 1 }
 0x23f   :  { %2492 = vsyncpa [#allocation9], 1 }
 0x240   :  { %2493 = vsyncpa [#allocation12], 1 }
 0x241   :  { %2494 = vsyncpa [#allocation4], 1 }

</bundles_post_ra>
